<compile_context>
chip_gen: v7x
topology: tpu7x:2x2x1
jax: 0.10.0
libtpu: 0.0.40
codegen_flags: <defaults>
</compile_context>

<pallas_src>
import math
import functools
import jax
import jax.numpy as jnp
from jax.experimental import pallas as pl
from jax.experimental.pallas import tpu as pltpu


# ----------------------------- kernels ------------------------------------ #

def _input_proj_kernel(x_ref, w_ref, b_ref, gx_ref):
    """x_ref: (B, TT, E); w_ref: (4, E, H); b_ref: (4, 1, H) f32;
    gx_ref: (4, TT, B, H) gate pre-activations (gate-major, time-major)."""
    B, TT, E = x_ref.shape
    H = w_ref.shape[-1]
    x = x_ref[...]
    # Batch-first -> time-major relayout done in-VMEM inside this parallel pass
    # (replaces the old wrapper HBM transpose), then one big matmul per gate.
    x2 = jnp.transpose(x, (1, 0, 2)).reshape(TT * B, E)     # (TT*B, E)
    for g in range(4):
        pre = jnp.dot(x2, w_ref[g], preferred_element_type=jnp.float32)
        gx_ref[g] = (pre.reshape(TT, B, H) + b_ref[g]).astype(gx_ref.dtype)


def _lstm_recurrence_kernel(gx_ref, whh_ref, h_seq_ref, h_out_ref, c_out_ref,
                            h_scr, c_scr):
    """gx_ref: (4, TT, B, H); whh_ref: (4, H, H); h_seq_ref: (TT, B, H);
    h_out_ref/c_out_ref: (B, H); h_scr/c_scr: (B, H) f32 scratch."""
    blk = pl.program_id(0)
    block_t = gx_ref.shape[1]

    @pl.when(blk == 0)
    def _():
        h_scr[...] = jnp.zeros_like(h_scr)
        c_scr[...] = jnp.zeros_like(c_scr)

    h = h_scr[...]
    c = c_scr[...]
    cdt = whh_ref.dtype
    w_i, w_f, w_g, w_o = whh_ref[0], whh_ref[1], whh_ref[2], whh_ref[3]

    # Statically unrolled time loop inside the block: only the small H x H
    # recurrent matmuls + elementwise remain on the serial critical path.
    for tt in range(block_t):
        hd = h.astype(cdt)
        i_g = jax.nn.sigmoid(
            gx_ref[0, tt] + jnp.dot(hd, w_i, preferred_element_type=jnp.float32))
        f_g = jax.nn.sigmoid(
            gx_ref[1, tt] + jnp.dot(hd, w_f, preferred_element_type=jnp.float32))
        g_g = jnp.tanh(
            gx_ref[2, tt] + jnp.dot(hd, w_g, preferred_element_type=jnp.float32))
        o_g = jax.nn.sigmoid(
            gx_ref[3, tt] + jnp.dot(hd, w_o, preferred_element_type=jnp.float32))
        c = f_g * c + i_g * g_g
        h = o_g * jnp.tanh(c)
        h_seq_ref[tt] = h.astype(h_seq_ref.dtype)

    h_scr[...] = h
    c_scr[...] = c

    @pl.when(blk == pl.num_programs(0) - 1)
    def _():
        h_out_ref[...] = h.astype(h_out_ref.dtype)
        c_out_ref[...] = c.astype(c_out_ref.dtype)


def _fc_kernel(h_ref, wfc_ref, bfc_ref, out_ref):
    """h_ref: (TT, B, H); wfc_ref: (H, TV); bfc_ref: (1, 1, TV) f32;
    out_ref: (B, TT, TV) logits written directly batch-first."""
    TT, B, H = h_ref.shape
    TV = wfc_ref.shape[-1]
    h2 = h_ref[...].reshape(TT * B, H)
    logits = jnp.dot(h2, wfc_ref[...], preferred_element_type=jnp.float32)
    logits = logits.reshape(TT, B, TV)
    out_ref[...] = (jnp.transpose(logits, (1, 0, 2)) + bfc_ref[...]).astype(out_ref.dtype)


# ----------------------------- wrapper ------------------------------------ #

def _choose_block_t(T):
    # Time blocks must be a multiple of 8 (sublane tiling of batch-first
    # (B, TT, *) blocks) or equal the full time extent.
    for bt in (32, 16, 8):
        if T % bt == 0:
            return bt
    return T


def _choose_block_v(V):
    # Vocab tiles must be multiples of 128 (lane tiling) or the full extent;
    # tiling keeps W_fc blocks small enough for v7x's 64 MiB VMEM.
    for tv in (2048, 1024, 512):
        if V % tv == 0:
            return tv
    return V


def lstm_forward(x_ids, params, *, compute_dtype=jnp.float32):
    """x_ids: (B, T) int32 token ids.
    Returns (logits (B, T, V) f32, (h (1, B, H), c (1, B, H)))."""
    emb = params["embedding"]                       # (V, E)
    w_ih = params["w_ih"]                           # (4H, E)  PyTorch layout
    w_hh = params["w_hh"]                           # (4H, H)
    b = params["b_ih"] + params["b_hh"]             # (4H,)  fused once
    w_fc = params["w_fc"]                           # (V, H)
    b_fc = params["b_fc"]                           # (V,)

    B, T = x_ids.shape
    V, E = emb.shape
    H = w_hh.shape[1]
    TT = _choose_block_t(T)
    nt = T // TT
    TV = _choose_block_v(V)
    nv = V // TV

    # TODO(synk): embedding lookup stays as jnp.take in the wrapper — it is a
    # data-dependent gather with no rectangular BlockSpec equivalent.
    x_bte = jnp.take(emb, x_ids, axis=0).astype(compute_dtype)     # (B, T, E)

    # One-time (small) weight relayouts: per-gate, "rhs" orientation.
    w_ih_g = jnp.transpose(w_ih.reshape(4, H, E), (0, 2, 1)).astype(compute_dtype)  # (4,E,H)
    w_hh_g = jnp.transpose(w_hh.reshape(4, H, H), (0, 2, 1)).astype(compute_dtype)  # (4,H,H)
    bias_g = b.reshape(4, 1, H).astype(jnp.float32)                                 # (4,1,H)
    wfc_t = jnp.transpose(w_fc).astype(compute_dtype)                               # (H,V)
    bfc = b_fc.reshape(1, 1, V).astype(jnp.float32)                                 # (1,1,V)

    parallel_1d = pltpu.CompilerParams(dimension_semantics=("parallel",))
    serial_1d = pltpu.CompilerParams(dimension_semantics=("arbitrary",))
    parallel_2d = pltpu.CompilerParams(dimension_semantics=("parallel", "parallel"))

    # Pass 1: input projection for all timesteps (parallel over time blocks).
    gates_x = pl.pallas_call(
        _input_proj_kernel,
        out_shape=jax.ShapeDtypeStruct((4, T, B, H), compute_dtype),
        grid_spec=pltpu.PrefetchScalarGridSpec(
            num_scalar_prefetch=0,
            grid=(nt,),
            in_specs=[
                pl.BlockSpec((B, TT, E), lambda t: (0, t, 0)),
                pl.BlockSpec((4, E, H), lambda t: (0, 0, 0)),
                pl.BlockSpec((4, 1, H), lambda t: (0, 0, 0)),
            ],
            out_specs=pl.BlockSpec((4, TT, B, H), lambda t: (0, t, 0, 0)),
        ),
        compiler_params=parallel_1d,
    )(x_bte, w_ih_g, bias_g)

    # Pass 2: serial recurrence (grid over time blocks, f32 state in scratch).
    h_seq, h_n, c_n = pl.pallas_call(
        _lstm_recurrence_kernel,
        out_shape=(
            jax.ShapeDtypeStruct((T, B, H), compute_dtype),
            jax.ShapeDtypeStruct((B, H), jnp.float32),
            jax.ShapeDtypeStruct((B, H), jnp.float32),
        ),
        grid_spec=pltpu.PrefetchScalarGridSpec(
            num_scalar_prefetch=0,
            grid=(nt,),
            in_specs=[
                pl.BlockSpec((4, TT, B, H), lambda t: (0, t, 0, 0)),
                pl.BlockSpec((4, H, H), lambda t: (0, 0, 0)),
            ],
            out_specs=[
                pl.BlockSpec((TT, B, H), lambda t: (t, 0, 0)),
                pl.BlockSpec((B, H), lambda t: (0, 0)),
                pl.BlockSpec((B, H), lambda t: (0, 0)),
            ],
            scratch_shapes=[
                pltpu.VMEM((B, H), jnp.float32),
                pltpu.VMEM((B, H), jnp.float32),
            ],
        ),
        compiler_params=serial_1d,
    )(gates_x, w_hh_g)

    # Pass 3: vocab projection, parallel over (time blocks, vocab tiles),
    # writing logits directly batch-first.
    logits = pl.pallas_call(
        _fc_kernel,
        out_shape=jax.ShapeDtypeStruct((B, T, V), jnp.float32),
        grid_spec=pltpu.PrefetchScalarGridSpec(
            num_scalar_prefetch=0,
            grid=(nt, nv),
            in_specs=[
                pl.BlockSpec((TT, B, H), lambda t, v: (t, 0, 0)),
                pl.BlockSpec((H, TV), lambda t, v: (0, v)),
                pl.BlockSpec((1, 1, TV), lambda t, v: (0, 0, v)),
            ],
            out_specs=pl.BlockSpec((B, TT, TV), lambda t, v: (0, t, v)),
        ),
        compiler_params=parallel_2d,
    )(h_seq, wfc_t, bfc)

    hidden = (h_n[None, :, :], c_n[None, :, :])     # (1, B, H) each, like nn.LSTM
    return logits, hidden


# --------------------------- params / reference ---------------------------- #

def init_params(key, vocab_size, embedding_dim, hidden_dim):
    ks = jax.random.split(key, 7)
    k_lstm = 1.0 / math.sqrt(hidden_dim)
    k_fc = 1.0 / math.sqrt(hidden_dim)
    u = lambda k, shape, bound: jax.random.uniform(
        k, shape, jnp.float32, -bound, bound)
    return {
        "embedding": jax.random.normal(ks[0], (vocab_size, embedding_dim), jnp.float32),
        "w_ih": u(ks[1], (4 * hidden_dim, embedding_dim), k_lstm),
        "w_hh": u(ks[2], (4 * hidden_dim, hidden_dim), k_lstm),
        "b_ih": u(ks[3], (4 * hidden_dim,), k_lstm),
        "b_hh": u(ks[4], (4 * hidden_dim,), k_lstm),
        "w_fc": u(ks[5], (vocab_size, hidden_dim), k_fc),
        "b_fc": u(ks[6], (vocab_size,), k_fc),
    }


def _reference_forward(x_ids, params):
    """Pure-JAX reference (lax.scan) for correctness checking."""
    emb = params["embedding"]
    w_ih, w_hh = params["w_ih"], params["w_hh"]
    b = params["b_ih"] + params["b_hh"]
    w_fc, b_fc = params["w_fc"], params["b_fc"]
    H = w_hh.shape[1]
    B = x_ids.shape[0]
    x = jnp.take(emb, x_ids, axis=0)               # (B, T, E)
    x = jnp.transpose(x, (1, 0, 2))                # (T, B, E)

    def step(carry, x_t):
        h, c = carry
        gates = x_t @ w_ih.T + h @ w_hh.T + b
        i = jax.nn.sigmoid(gates[:, 0 * H:1 * H])
        f = jax.nn.sigmoid(gates[:, 1 * H:2 * H])
        g = jnp.tanh(gates[:, 2 * H:3 * H])
        o = jax.nn.sigmoid(gates[:, 3 * H:4 * H])
        c = f * c + i * g
        h = o * jnp.tanh(c)
        return (h, c), h

    h0 = jnp.zeros((B, H), jnp.float32)
    (h_n, c_n), hs = jax.lax.scan(step, (h0, h0), x)
    logits = jnp.einsum("tbh,vh->tbv", hs, w_fc) + b_fc
    return jnp.transpose(logits, (1, 0, 2)), (h_n[None], c_n[None])


if __name__ == "__main__":
    vocab_size, embedding_dim, hidden_dim = 64, 32, 32
    batch, seq = 2, 8

    key = jax.random.PRNGKey(0)
    k_param, k_data = jax.random.split(key)
    params = init_params(k_param, vocab_size, embedding_dim, hidden_dim)
    x_ids = jax.random.randint(k_data, (batch, seq), 0, vocab_size, jnp.int32)

    # f32 path: must match the pure-JAX reference tightly.
    logits, (h_n, c_n) = jax.jit(lstm_forward)(x_ids, params)
    jax.block_until_ready((logits, h_n, c_n))

    ref_logits, (ref_h, ref_c) = _reference_forward(x_ids, params)
    assert logits.shape == (batch, seq, vocab_size)
    assert h_n.shape == (1, batch, hidden_dim) and c_n.shape == (1, batch, hidden_dim)
    assert jnp.allclose(logits, ref_logits, rtol=1e-4, atol=1e-4)
    assert jnp.allclose(h_n, ref_h, rtol=1e-4, atol=1e-4)
    assert jnp.allclose(c_n, ref_c, rtol=1e-4, atol=1e-4)

    # bf16 compute path (weights/activations bf16, f32 accumulation & state):
    # smoke-check it runs and stays close to the f32 reference.
    fwd_bf16 = jax.jit(functools.partial(lstm_forward, compute_dtype=jnp.bfloat16))
    logits_bf16, (h_bf16, c_bf16) = fwd_bf16(x_ids, params)
    jax.block_until_ready((logits_bf16, h_bf16, c_bf16))
    assert jnp.all(jnp.isfinite(logits_bf16))
    assert jnp.allclose(logits_bf16, ref_logits, rtol=2e-1, atol=2e-1)

    print("KERNEL_OK")
</pallas_src>

<mosaic_0001>
module attributes {stable_mosaic.version = 11 : i64} {
  func.func @_input_proj_kernel(%arg0: i32, %arg1: memref<2x8x32xf32, #tpu.memory_space<vmem>>, %arg2: memref<4x32x32xf32, #tpu.memory_space<vmem>>, %arg3: memref<4x1x32xf32, #tpu.memory_space<vmem>>, %arg4: memref<4x8x2x32xf32, #tpu.memory_space<vmem>>) attributes {dimension_semantics = [#tpu.dimension_semantics<parallel>], iteration_bounds = array<i64: 1>, scalar_prefetch = 0 : i64, scratch_operands = 0 : i64, tpu.core_type = #tpu.core_type<tc>, window_params = [{transform_indices = @transform_0, window_bounds = array<i64: 2, 8, 32>}, {pipeline_mode = #tpu.pipeline_mode<synchronous>, transform_indices = @transform_1, window_bounds = array<i64: 4, 32, 32>}, {pipeline_mode = #tpu.pipeline_mode<synchronous>, transform_indices = @transform_2, window_bounds = array<i64: 4, 1, 32>}, {transform_indices = @transform_3, window_bounds = array<i64: 4, 8, 2, 32>}]} {
    %c0 = arith.constant 0 : index
    %c0_0 = arith.constant 0 : index
    %c0_1 = arith.constant 0 : index
    %0 = vector.load %arg1[%c0, %c0_0, %c0_1] : memref<2x8x32xf32, #tpu.memory_space<vmem>>, vector<2x8x32xf32>
    %1 = tpu.transpose %0, [1, 0, 2] : vector<2x8x32xf32> -> vector<8x2x32xf32>
    %2 = vector.shape_cast %1 : vector<8x2x32xf32> to vector<16x32xf32>
    %c0_2 = arith.constant 0 : index
    %c0_3 = arith.constant 0 : index
    %c0_4 = arith.constant 0 : index
    %3 = vector.load %arg2[%c0_2, %c0_3, %c0_4] : memref<4x32x32xf32, #tpu.memory_space<vmem>>, vector<1x32x32xf32>
    %4 = vector.shape_cast %3 : vector<1x32x32xf32> to vector<32x32xf32>
    %cst = arith.constant dense<0.000000e+00> : vector<16x32xf32>
    %5 = tpu.matmul %2, %4, %cst {dimension_numbers = #tpu.dot_dimension_numbers<[1], [0], [0], [1], [0, 0, 1, 1], [], []>} : vector<16x32xf32>, vector<32x32xf32>, vector<16x32xf32> -> vector<16x32xf32>
    %6 = vector.shape_cast %5 : vector<16x32xf32> to vector<8x2x32xf32>
    %c0_5 = arith.constant 0 : index
    %c0_6 = arith.constant 0 : index
    %c0_7 = arith.constant 0 : index
    %7 = vector.load %arg3[%c0_5, %c0_6, %c0_7] : memref<4x1x32xf32, #tpu.memory_space<vmem>>, vector<1x1x32xf32>
    %8 = vector.shape_cast %7 : vector<1x1x32xf32> to vector<1x32xf32>
    %9 = vector.shape_cast %8 : vector<1x32xf32> to vector<1x1x32xf32>
    %10 = vector.broadcast %9 : vector<1x1x32xf32> to vector<8x2x32xf32>
    %11 = arith.addf %6, %10 : vector<8x2x32xf32>
    %c0_8 = arith.constant 0 : index
    %c0_9 = arith.constant 0 : index
    %c0_10 = arith.constant 0 : index
    %c0_11 = arith.constant 0 : index
    %12 = vector.load %arg4[%c0_8, %c0_9, %c0_10, %c0_11] : memref<4x8x2x32xf32, #tpu.memory_space<vmem>>, vector<1x8x2x32xf32>
    %13 = vector.shape_cast %12 : vector<1x8x2x32xf32> to vector<8x2x32xf32>
    %14 = vector.shape_cast %11 : vector<8x2x32xf32> to vector<1x8x2x32xf32>
    tpu.vector_store %arg4[%c0_8, %c0_9, %c0_10, %c0_11], %14 {strides = array<i32>} : memref<4x8x2x32xf32, #tpu.memory_space<vmem>>, vector<1x8x2x32xf32>,
    %c1 = arith.constant 1 : index
    %c0_12 = arith.constant 0 : index
    %c0_13 = arith.constant 0 : index
    %15 = vector.load %arg2[%c1, %c0_12, %c0_13] : memref<4x32x32xf32, #tpu.memory_space<vmem>>, vector<1x32x32xf32>
    %16 = vector.shape_cast %15 : vector<1x32x32xf32> to vector<32x32xf32>
    %cst_14 = arith.constant dense<0.000000e+00> : vector<16x32xf32>
    %17 = tpu.matmul %2, %16, %cst_14 {dimension_numbers = #tpu.dot_dimension_numbers<[1], [0], [0], [1], [0, 0, 1, 1], [], []>} : vector<16x32xf32>, vector<32x32xf32>, vector<16x32xf32> -> vector<16x32xf32>
    %18 = vector.shape_cast %17 : vector<16x32xf32> to vector<8x2x32xf32>
    %c1_15 = arith.constant 1 : index
    %c0_16 = arith.constant 0 : index
    %c0_17 = arith.constant 0 : index
    %19 = vector.load %arg3[%c1_15, %c0_16, %c0_17] : memref<4x1x32xf32, #tpu.memory_space<vmem>>, vector<1x1x32xf32>
    %20 = vector.shape_cast %19 : vector<1x1x32xf32> to vector<1x32xf32>
    %21 = vector.shape_cast %20 : vector<1x32xf32> to vector<1x1x32xf32>
    %22 = vector.broadcast %21 : vector<1x1x32xf32> to vector<8x2x32xf32>
    %23 = arith.addf %18, %22 : vector<8x2x32xf32>
    %c1_18 = arith.constant 1 : index
    %c0_19 = arith.constant 0 : index
    %c0_20 = arith.constant 0 : index
    %c0_21 = arith.constant 0 : index
    %24 = vector.load %arg4[%c1_18, %c0_19, %c0_20, %c0_21] : memref<4x8x2x32xf32, #tpu.memory_space<vmem>>, vector<1x8x2x32xf32>
    %25 = vector.shape_cast %24 : vector<1x8x2x32xf32> to vector<8x2x32xf32>
    %26 = vector.shape_cast %23 : vector<8x2x32xf32> to vector<1x8x2x32xf32>
    tpu.vector_store %arg4[%c1_18, %c0_19, %c0_20, %c0_21], %26 {strides = array<i32>} : memref<4x8x2x32xf32, #tpu.memory_space<vmem>>, vector<1x8x2x32xf32>,
    %c2 = arith.constant 2 : index
    %c0_22 = arith.constant 0 : index
    %c0_23 = arith.constant 0 : index
    %27 = vector.load %arg2[%c2, %c0_22, %c0_23] : memref<4x32x32xf32, #tpu.memory_space<vmem>>, vector<1x32x32xf32>
    %28 = vector.shape_cast %27 : vector<1x32x32xf32> to vector<32x32xf32>
    %cst_24 = arith.constant dense<0.000000e+00> : vector<16x32xf32>
    %29 = tpu.matmul %2, %28, %cst_24 {dimension_numbers = #tpu.dot_dimension_numbers<[1], [0], [0], [1], [0, 0, 1, 1], [], []>} : vector<16x32xf32>, vector<32x32xf32>, vector<16x32xf32> -> vector<16x32xf32>
    %30 = vector.shape_cast %29 : vector<16x32xf32> to vector<8x2x32xf32>
    %c2_25 = arith.constant 2 : index
    %c0_26 = arith.constant 0 : index
    %c0_27 = arith.constant 0 : index
    %31 = vector.load %arg3[%c2_25, %c0_26, %c0_27] : memref<4x1x32xf32, #tpu.memory_space<vmem>>, vector<1x1x32xf32>
    %32 = vector.shape_cast %31 : vector<1x1x32xf32> to vector<1x32xf32>
    %33 = vector.shape_cast %32 : vector<1x32xf32> to vector<1x1x32xf32>
    %34 = vector.broadcast %33 : vector<1x1x32xf32> to vector<8x2x32xf32>
    %35 = arith.addf %30, %34 : vector<8x2x32xf32>
    %c2_28 = arith.constant 2 : index
    %c0_29 = arith.constant 0 : index
    %c0_30 = arith.constant 0 : index
    %c0_31 = arith.constant 0 : index
    %36 = vector.load %arg4[%c2_28, %c0_29, %c0_30, %c0_31] : memref<4x8x2x32xf32, #tpu.memory_space<vmem>>, vector<1x8x2x32xf32>
    %37 = vector.shape_cast %36 : vector<1x8x2x32xf32> to vector<8x2x32xf32>
    %38 = vector.shape_cast %35 : vector<8x2x32xf32> to vector<1x8x2x32xf32>
    tpu.vector_store %arg4[%c2_28, %c0_29, %c0_30, %c0_31], %38 {strides = array<i32>} : memref<4x8x2x32xf32, #tpu.memory_space<vmem>>, vector<1x8x2x32xf32>,
    %c3 = arith.constant 3 : index
    %c0_32 = arith.constant 0 : index
    %c0_33 = arith.constant 0 : index
    %39 = vector.load %arg2[%c3, %c0_32, %c0_33] : memref<4x32x32xf32, #tpu.memory_space<vmem>>, vector<1x32x32xf32>
    %40 = vector.shape_cast %39 : vector<1x32x32xf32> to vector<32x32xf32>
    %cst_34 = arith.constant dense<0.000000e+00> : vector<16x32xf32>
    %41 = tpu.matmul %2, %40, %cst_34 {dimension_numbers = #tpu.dot_dimension_numbers<[1], [0], [0], [1], [0, 0, 1, 1], [], []>} : vector<16x32xf32>, vector<32x32xf32>, vector<16x32xf32> -> vector<16x32xf32>
    %42 = vector.shape_cast %41 : vector<16x32xf32> to vector<8x2x32xf32>
    %c3_35 = arith.constant 3 : index
    %c0_36 = arith.constant 0 : index
    %c0_37 = arith.constant 0 : index
    %43 = vector.load %arg3[%c3_35, %c0_36, %c0_37] : memref<4x1x32xf32, #tpu.memory_space<vmem>>, vector<1x1x32xf32>
    %44 = vector.shape_cast %43 : vector<1x1x32xf32> to vector<1x32xf32>
    %45 = vector.shape_cast %44 : vector<1x32xf32> to vector<1x1x32xf32>
    %46 = vector.broadcast %45 : vector<1x1x32xf32> to vector<8x2x32xf32>
    %47 = arith.addf %42, %46 : vector<8x2x32xf32>
    %c3_38 = arith.constant 3 : index
    %c0_39 = arith.constant 0 : index
    %c0_40 = arith.constant 0 : index
    %c0_41 = arith.constant 0 : index
    %48 = vector.load %arg4[%c3_38, %c0_39, %c0_40, %c0_41] : memref<4x8x2x32xf32, #tpu.memory_space<vmem>>, vector<1x8x2x32xf32>
    %49 = vector.shape_cast %48 : vector<1x8x2x32xf32> to vector<8x2x32xf32>
    %50 = vector.shape_cast %47 : vector<8x2x32xf32> to vector<1x8x2x32xf32>
    tpu.vector_store %arg4[%c3_38, %c0_39, %c0_40, %c0_41], %50 {strides = array<i32>} : memref<4x8x2x32xf32, #tpu.memory_space<vmem>>, vector<1x8x2x32xf32>,
    return
  }
  func.func @transform_0(%arg0: i32) -> (i32, i32, i32) {
    %c0_i32 = arith.constant 0 : i32
    %c0_i32_0 = arith.constant 0 : i32
    %c0_i32_1 = arith.constant 0 : i32
    return %c0_i32, %arg0, %c0_i32_0 : i32, i32, i32
  }
  func.func @transform_1(%arg0: i32) -> (i32, i32, i32) {
    %c0_i32 = arith.constant 0 : i32
    %c0_i32_0 = arith.constant 0 : i32
    %c0_i32_1 = arith.constant 0 : i32
    %c0_i32_2 = arith.constant 0 : i32
    return %c0_i32, %c0_i32_0, %c0_i32_1 : i32, i32, i32
  }
  func.func @transform_2(%arg0: i32) -> (i32, i32, i32) {
    %c0_i32 = arith.constant 0 : i32
    %c0_i32_0 = arith.constant 0 : i32
    %c0_i32_1 = arith.constant 0 : i32
    %c0_i32_2 = arith.constant 0 : i32
    return %c0_i32, %c0_i32_0, %c0_i32_1 : i32, i32, i32
  }
  func.func @transform_3(%arg0: i32) -> (i32, i32, i32, i32) {
    %c0_i32 = arith.constant 0 : i32
    %c0_i32_0 = arith.constant 0 : i32
    %c0_i32_1 = arith.constant 0 : i32
    %c0_i32_2 = arith.constant 0 : i32
    return %c0_i32, %arg0, %c0_i32_0, %c0_i32_1 : i32, i32, i32, i32
  }
}

module attributes {stable_mosaic.version = 11 : i64} {
  func.func @_fc_kernel(%arg0: i32, %arg1: i32, %arg2: memref<8x2x32xf32, #tpu.memory_space<vmem>>, %arg3: memref<32x64xf32, #tpu.memory_space<vmem>>, %arg4: memref<1x1x64xf32, #tpu.memory_space<vmem>>, %arg5: memref<2x8x64xf32, #tpu.memory_space<vmem>>) attributes {dimension_semantics = [#tpu.dimension_semantics<parallel>, #tpu.dimension_semantics<parallel>], iteration_bounds = array<i64: 1, 1>, scalar_prefetch = 0 : i64, scratch_operands = 0 : i64, tpu.core_type = #tpu.core_type<tc>, window_params = [{transform_indices = @transform_0, window_bounds = array<i64: 8, 2, 32>}, {transform_indices = @transform_1, window_bounds = array<i64: 32, 64>}, {transform_indices = @transform_2, window_bounds = array<i64: 1, 1, 64>}, {transform_indices = @transform_3, window_bounds = array<i64: 2, 8, 64>}]} {
    %c0 = arith.constant 0 : index
    %c0_0 = arith.constant 0 : index
    %c0_1 = arith.constant 0 : index
    %0 = vector.load %arg2[%c0, %c0_0, %c0_1] : memref<8x2x32xf32, #tpu.memory_space<vmem>>, vector<8x2x32xf32>
    %1 = vector.shape_cast %0 : vector<8x2x32xf32> to vector<16x32xf32>
    %c0_2 = arith.constant 0 : index
    %c0_3 = arith.constant 0 : index
    %2 = vector.load %arg3[%c0_2, %c0_3] : memref<32x64xf32, #tpu.memory_space<vmem>>, vector<32x64xf32>
    %cst = arith.constant dense<0.000000e+00> : vector<16x64xf32>
    %3 = tpu.matmul %1, %2, %cst {dimension_numbers = #tpu.dot_dimension_numbers<[1], [0], [0], [1], [0, 0, 1, 1], [], []>} : vector<16x32xf32>, vector<32x64xf32>, vector<16x64xf32> -> vector<16x64xf32>
    %4 = vector.shape_cast %3 : vector<16x64xf32> to vector<8x2x64xf32>
    %5 = tpu.transpose %4, [1, 0, 2] : vector<8x2x64xf32> -> vector<2x8x64xf32>
    %c0_4 = arith.constant 0 : index
    %c0_5 = arith.constant 0 : index
    %c0_6 = arith.constant 0 : index
    %6 = vector.load %arg4[%c0_4, %c0_5, %c0_6] : memref<1x1x64xf32, #tpu.memory_space<vmem>>, vector<1x1x64xf32>
    %7 = vector.broadcast %6 : vector<1x1x64xf32> to vector<2x8x64xf32>
    %8 = arith.addf %5, %7 : vector<2x8x64xf32>
    %c0_7 = arith.constant 0 : index
    %c0_8 = arith.constant 0 : index
    %c0_9 = arith.constant 0 : index
    %9 = vector.load %arg5[%c0_7, %c0_8, %c0_9] : memref<2x8x64xf32, #tpu.memory_space<vmem>>, vector<2x8x64xf32>
    tpu.vector_store %arg5[%c0_7, %c0_8, %c0_9], %8 {strides = array<i32>} : memref<2x8x64xf32, #tpu.memory_space<vmem>>, vector<2x8x64xf32>,
    return
  }
  func.func @transform_0(%arg0: i32, %arg1: i32) -> (i32, i32, i32) {
    %c0_i32 = arith.constant 0 : i32
    %c0_i32_0 = arith.constant 0 : i32
    %c0_i32_1 = arith.constant 0 : i32
    return %arg0, %c0_i32, %c0_i32_0 : i32, i32, i32
  }
  func.func @transform_1(%arg0: i32, %arg1: i32) -> (i32, i32) {
    %c0_i32 = arith.constant 0 : i32
    %c0_i32_0 = arith.constant 0 : i32
    return %c0_i32, %arg1 : i32, i32
  }
  func.func @transform_2(%arg0: i32, %arg1: i32) -> (i32, i32, i32) {
    %c0_i32 = arith.constant 0 : i32
    %c0_i32_0 = arith.constant 0 : i32
    %c0_i32_1 = arith.constant 0 : i32
    return %c0_i32, %c0_i32_0, %arg1 : i32, i32, i32
  }
  func.func @transform_3(%arg0: i32, %arg1: i32) -> (i32, i32, i32) {
    %c0_i32 = arith.constant 0 : i32
    %c0_i32_0 = arith.constant 0 : i32
    return %c0_i32, %arg0, %arg1 : i32, i32, i32
  }
}

module attributes {stable_mosaic.version = 11 : i64} {
  func.func @_lstm_recurrence_kernel(%arg0: i32, %arg1: memref<4x8x2x32xf32, #tpu.memory_space<vmem>>, %arg2: memref<4x32x32xf32, #tpu.memory_space<vmem>>, %arg3: memref<8x2x32xf32, #tpu.memory_space<vmem>>, %arg4: memref<2x32xf32, #tpu.memory_space<vmem>>, %arg5: memref<2x32xf32, #tpu.memory_space<vmem>>, %arg6: memref<2x32xf32, #tpu.memory_space<vmem>>, %arg7: memref<2x32xf32, #tpu.memory_space<vmem>>) attributes {dimension_semantics = [#tpu.dimension_semantics<arbitrary>], iteration_bounds = array<i64: 1>, scalar_prefetch = 0 : i64, scratch_operands = 2 : i64, tpu.core_type = #tpu.core_type<tc>, window_params = [{transform_indices = @transform_0, window_bounds = array<i64: 4, 8, 2, 32>}, {pipeline_mode = #tpu.pipeline_mode<synchronous>, transform_indices = @transform_1, window_bounds = array<i64: 4, 32, 32>}, {transform_indices = @transform_2, window_bounds = array<i64: 8, 2, 32>}, {pipeline_mode = #tpu.pipeline_mode<synchronous>, transform_indices = @transform_3, window_bounds = array<i64: 2, 32>}, {pipeline_mode = #tpu.pipeline_mode<synchronous>, transform_indices = @transform_4, window_bounds = array<i64: 2, 32>}]} {
    %c0_i32 = arith.constant 0 : i32
    %0 = arith.cmpi eq, %arg0, %c0_i32 : i32
    %1 = arith.extui %0 : i1 to i32
    %c0_i32_0 = arith.constant 0 : i32
    %2 = arith.cmpi ne, %1, %c0_i32_0 : i32
    scf.if %2 {
      %cst_222 = arith.constant 0.000000e+00 : f32
      %338 = vector.broadcast %cst_222 : f32 to vector<2x32xf32>
      %c0_223 = arith.constant 0 : index
      %c0_224 = arith.constant 0 : index
      %339 = vector.load %arg6[%c0_223, %c0_224] : memref<2x32xf32, #tpu.memory_space<vmem>>, vector<2x32xf32>
      tpu.vector_store %arg6[%c0_223, %c0_224], %338 {strides = array<i32>} : memref<2x32xf32, #tpu.memory_space<vmem>>, vector<2x32xf32>,
      %cst_225 = arith.constant 0.000000e+00 : f32
      %340 = vector.broadcast %cst_225 : f32 to vector<2x32xf32>
      %c0_226 = arith.constant 0 : index
      %c0_227 = arith.constant 0 : index
      %341 = vector.load %arg7[%c0_226, %c0_227] : memref<2x32xf32, #tpu.memory_space<vmem>>, vector<2x32xf32>
      tpu.vector_store %arg7[%c0_226, %c0_227], %340 {strides = array<i32>} : memref<2x32xf32, #tpu.memory_space<vmem>>, vector<2x32xf32>,
    } else {
    }
    %c0 = arith.constant 0 : index
    %c0_1 = arith.constant 0 : index
    %3 = vector.load %arg6[%c0, %c0_1] : memref<2x32xf32, #tpu.memory_space<vmem>>, vector<2x32xf32>
    %c0_2 = arith.constant 0 : index
    %c0_3 = arith.constant 0 : index
    %4 = vector.load %arg7[%c0_2, %c0_3] : memref<2x32xf32, #tpu.memory_space<vmem>>, vector<2x32xf32>
    %c0_4 = arith.constant 0 : index
    %c0_5 = arith.constant 0 : index
    %c0_6 = arith.constant 0 : index
    %5 = vector.load %arg2[%c0_4, %c0_5, %c0_6] : memref<4x32x32xf32, #tpu.memory_space<vmem>>, vector<1x32x32xf32>
    %6 = vector.shape_cast %5 : vector<1x32x32xf32> to vector<32x32xf32>
    %c1 = arith.constant 1 : index
    %c0_7 = arith.constant 0 : index
    %c0_8 = arith.constant 0 : index
    %7 = vector.load %arg2[%c1, %c0_7, %c0_8] : memref<4x32x32xf32, #tpu.memory_space<vmem>>, vector<1x32x32xf32>
    %8 = vector.shape_cast %7 : vector<1x32x32xf32> to vector<32x32xf32>
    %c2 = arith.constant 2 : index
    %c0_9 = arith.constant 0 : index
    %c0_10 = arith.constant 0 : index
    %9 = vector.load %arg2[%c2, %c0_9, %c0_10] : memref<4x32x32xf32, #tpu.memory_space<vmem>>, vector<1x32x32xf32>
    %10 = vector.shape_cast %9 : vector<1x32x32xf32> to vector<32x32xf32>
    %c3 = arith.constant 3 : index
    %c0_11 = arith.constant 0 : index
    %c0_12 = arith.constant 0 : index
    %11 = vector.load %arg2[%c3, %c0_11, %c0_12] : memref<4x32x32xf32, #tpu.memory_space<vmem>>, vector<1x32x32xf32>
    %12 = vector.shape_cast %11 : vector<1x32x32xf32> to vector<32x32xf32>
    %c0_13 = arith.constant 0 : index
    %c0_14 = arith.constant 0 : index
    %c0_15 = arith.constant 0 : index
    %c0_16 = arith.constant 0 : index
    %13 = vector.load %arg1[%c0_13, %c0_14, %c0_15, %c0_16] : memref<4x8x2x32xf32, #tpu.memory_space<vmem>>, vector<1x1x2x32xf32>
    %14 = vector.shape_cast %13 : vector<1x1x2x32xf32> to vector<2x32xf32>
    %cst = arith.constant dense<0.000000e+00> : vector<2x32xf32>
    %15 = tpu.matmul %3, %6, %cst {dimension_numbers = #tpu.dot_dimension_numbers<[1], [0], [0], [1], [0, 0, 1, 1], [], []>} : vector<2x32xf32>, vector<32x32xf32>, vector<2x32xf32> -> vector<2x32xf32>
    %16 = arith.addf %14, %15 : vector<2x32xf32>
    %17 = arith.negf %16 : vector<2x32xf32>
    %18 = math.exp %17 : vector<2x32xf32>
    %cst_17 = arith.constant 1.000000e+00 : f32
    %19 = vector.broadcast %cst_17 : f32 to vector<2x32xf32>
    %20 = arith.addf %19, %18 : vector<2x32xf32>
    %21 = arith.divf %19, %20 : vector<2x32xf32>
    %c1_18 = arith.constant 1 : index
    %c0_19 = arith.constant 0 : index
    %c0_20 = arith.constant 0 : index
    %c0_21 = arith.constant 0 : index
    %22 = vector.load %arg1[%c1_18, %c0_19, %c0_20, %c0_21] : memref<4x8x2x32xf32, #tpu.memory_space<vmem>>, vector<1x1x2x32xf32>
    %23 = vector.shape_cast %22 : vector<1x1x2x32xf32> to vector<2x32xf32>
    %cst_22 = arith.constant dense<0.000000e+00> : vector<2x32xf32>
    %24 = tpu.matmul %3, %8, %cst_22 {dimension_numbers = #tpu.dot_dimension_numbers<[1], [0], [0], [1], [0, 0, 1, 1], [], []>} : vector<2x32xf32>, vector<32x32xf32>, vector<2x32xf32> -> vector<2x32xf32>
    %25 = arith.addf %23, %24 : vector<2x32xf32>
    %26 = arith.negf %25 : vector<2x32xf32>
    %27 = math.exp %26 : vector<2x32xf32>
    %cst_23 = arith.constant 1.000000e+00 : f32
    %28 = vector.broadcast %cst_23 : f32 to vector<2x32xf32>
    %29 = arith.addf %28, %27 : vector<2x32xf32>
    %30 = arith.divf %28, %29 : vector<2x32xf32>
    %c2_24 = arith.constant 2 : index
    %c0_25 = arith.constant 0 : index
    %c0_26 = arith.constant 0 : index
    %c0_27 = arith.constant 0 : index
    %31 = vector.load %arg1[%c2_24, %c0_25, %c0_26, %c0_27] : memref<4x8x2x32xf32, #tpu.memory_space<vmem>>, vector<1x1x2x32xf32>
    %32 = vector.shape_cast %31 : vector<1x1x2x32xf32> to vector<2x32xf32>
    %cst_28 = arith.constant dense<0.000000e+00> : vector<2x32xf32>
    %33 = tpu.matmul %3, %10, %cst_28 {dimension_numbers = #tpu.dot_dimension_numbers<[1], [0], [0], [1], [0, 0, 1, 1], [], []>} : vector<2x32xf32>, vector<32x32xf32>, vector<2x32xf32> -> vector<2x32xf32>
    %34 = arith.addf %32, %33 : vector<2x32xf32>
    %35 = math.tanh %34 : vector<2x32xf32>
    %c3_29 = arith.constant 3 : index
    %c0_30 = arith.constant 0 : index
    %c0_31 = arith.constant 0 : index
    %c0_32 = arith.constant 0 : index
    %36 = vector.load %arg1[%c3_29, %c0_30, %c0_31, %c0_32] : memref<4x8x2x32xf32, #tpu.memory_space<vmem>>, vector<1x1x2x32xf32>
    %37 = vector.shape_cast %36 : vector<1x1x2x32xf32> to vector<2x32xf32>
    %cst_33 = arith.constant dense<0.000000e+00> : vector<2x32xf32>
    %38 = tpu.matmul %3, %12, %cst_33 {dimension_numbers = #tpu.dot_dimension_numbers<[1], [0], [0], [1], [0, 0, 1, 1], [], []>} : vector<2x32xf32>, vector<32x32xf32>, vector<2x32xf32> -> vector<2x32xf32>
    %39 = arith.addf %37, %38 : vector<2x32xf32>
    %40 = arith.negf %39 : vector<2x32xf32>
    %41 = math.exp %40 : vector<2x32xf32>
    %cst_34 = arith.constant 1.000000e+00 : f32
    %42 = vector.broadcast %cst_34 : f32 to vector<2x32xf32>
    %43 = arith.addf %42, %41 : vector<2x32xf32>
    %44 = arith.divf %42, %43 : vector<2x32xf32>
    %45 = arith.mulf %30, %4 : vector<2x32xf32>
    %46 = arith.mulf %21, %35 : vector<2x32xf32>
    %47 = arith.addf %45, %46 : vector<2x32xf32>
    %48 = math.tanh %47 : vector<2x32xf32>
    %49 = arith.mulf %44, %48 : vector<2x32xf32>
    %c0_35 = arith.constant 0 : index
    %c0_36 = arith.constant 0 : index
    %c0_37 = arith.constant 0 : index
    %50 = vector.load %arg3[%c0_35, %c0_36, %c0_37] : memref<8x2x32xf32, #tpu.memory_space<vmem>>, vector<1x2x32xf32>
    %51 = vector.shape_cast %50 : vector<1x2x32xf32> to vector<2x32xf32>
    %52 = vector.shape_cast %49 : vector<2x32xf32> to vector<1x2x32xf32>
    tpu.vector_store %arg3[%c0_35, %c0_36, %c0_37], %52 {strides = array<i32>} : memref<8x2x32xf32, #tpu.memory_space<vmem>>, vector<1x2x32xf32>,
    %c0_38 = arith.constant 0 : index
    %c1_39 = arith.constant 1 : index
    %c0_40 = arith.constant 0 : index
    %c0_41 = arith.constant 0 : index
    %53 = vector.load %arg1[%c0_38, %c1_39, %c0_40, %c0_41] : memref<4x8x2x32xf32, #tpu.memory_space<vmem>>, vector<1x1x2x32xf32>
    %54 = vector.shape_cast %53 : vector<1x1x2x32xf32> to vector<2x32xf32>
    %cst_42 = arith.constant dense<0.000000e+00> : vector<2x32xf32>
    %55 = tpu.matmul %49, %6, %cst_42 {dimension_numbers = #tpu.dot_dimension_numbers<[1], [0], [0], [1], [0, 0, 1, 1], [], []>} : vector<2x32xf32>, vector<32x32xf32>, vector<2x32xf32> -> vector<2x32xf32>
    %56 = arith.addf %54, %55 : vector<2x32xf32>
    %57 = arith.negf %56 : vector<2x32xf32>
    %58 = math.exp %57 : vector<2x32xf32>
    %cst_43 = arith.constant 1.000000e+00 : f32
    %59 = vector.broadcast %cst_43 : f32 to vector<2x32xf32>
    %60 = arith.addf %59, %58 : vector<2x32xf32>
    %61 = arith.divf %59, %60 : vector<2x32xf32>
    %c1_44 = arith.constant 1 : index
    %c1_45 = arith.constant 1 : index
    %c0_46 = arith.constant 0 : index
    %c0_47 = arith.constant 0 : index
    %62 = vector.load %arg1[%c1_44, %c1_45, %c0_46, %c0_47] : memref<4x8x2x32xf32, #tpu.memory_space<vmem>>, vector<1x1x2x32xf32>
    %63 = vector.shape_cast %62 : vector<1x1x2x32xf32> to vector<2x32xf32>
    %cst_48 = arith.constant dense<0.000000e+00> : vector<2x32xf32>
    %64 = tpu.matmul %49, %8, %cst_48 {dimension_numbers = #tpu.dot_dimension_numbers<[1], [0], [0], [1], [0, 0, 1, 1], [], []>} : vector<2x32xf32>, vector<32x32xf32>, vector<2x32xf32> -> vector<2x32xf32>
    %65 = arith.addf %63, %64 : vector<2x32xf32>
    %66 = arith.negf %65 : vector<2x32xf32>
    %67 = math.exp %66 : vector<2x32xf32>
    %cst_49 = arith.constant 1.000000e+00 : f32
    %68 = vector.broadcast %cst_49 : f32 to vector<2x32xf32>
    %69 = arith.addf %68, %67 : vector<2x32xf32>
    %70 = arith.divf %68, %69 : vector<2x32xf32>
    %c2_50 = arith.constant 2 : index
    %c1_51 = arith.constant 1 : index
    %c0_52 = arith.constant 0 : index
    %c0_53 = arith.constant 0 : index
    %71 = vector.load %arg1[%c2_50, %c1_51, %c0_52, %c0_53] : memref<4x8x2x32xf32, #tpu.memory_space<vmem>>, vector<1x1x2x32xf32>
    %72 = vector.shape_cast %71 : vector<1x1x2x32xf32> to vector<2x32xf32>
    %cst_54 = arith.constant dense<0.000000e+00> : vector<2x32xf32>
    %73 = tpu.matmul %49, %10, %cst_54 {dimension_numbers = #tpu.dot_dimension_numbers<[1], [0], [0], [1], [0, 0, 1, 1], [], []>} : vector<2x32xf32>, vector<32x32xf32>, vector<2x32xf32> -> vector<2x32xf32>
    %74 = arith.addf %72, %73 : vector<2x32xf32>
    %75 = math.tanh %74 : vector<2x32xf32>
    %c3_55 = arith.constant 3 : index
    %c1_56 = arith.constant 1 : index
    %c0_57 = arith.constant 0 : index
    %c0_58 = arith.constant 0 : index
    %76 = vector.load %arg1[%c3_55, %c1_56, %c0_57, %c0_58] : memref<4x8x2x32xf32, #tpu.memory_space<vmem>>, vector<1x1x2x32xf32>
    %77 = vector.shape_cast %76 : vector<1x1x2x32xf32> to vector<2x32xf32>
    %cst_59 = arith.constant dense<0.000000e+00> : vector<2x32xf32>
    %78 = tpu.matmul %49, %12, %cst_59 {dimension_numbers = #tpu.dot_dimension_numbers<[1], [0], [0], [1], [0, 0, 1, 1], [], []>} : vector<2x32xf32>, vector<32x32xf32>, vector<2x32xf32> -> vector<2x32xf32>
    %79 = arith.addf %77, %78 : vector<2x32xf32>
    %80 = arith.negf %79 : vector<2x32xf32>
    %81 = math.exp %80 : vector<2x32xf32>
    %cst_60 = arith.constant 1.000000e+00 : f32
    %82 = vector.broadcast %cst_60 : f32 to vector<2x32xf32>
    %83 = arith.addf %82, %81 : vector<2x32xf32>
    %84 = arith.divf %82, %83 : vector<2x32xf32>
    %85 = arith.mulf %70, %47 : vector<2x32xf32>
    %86 = arith.mulf %61, %75 : vector<2x32xf32>
    %87 = arith.addf %85, %86 : vector<2x32xf32>
    %88 = math.tanh %87 : vector<2x32xf32>
    %89 = arith.mulf %84, %88 : vector<2x32xf32>
    %c1_61 = arith.constant 1 : index
    %c0_62 = arith.constant 0 : index
    %c0_63 = arith.constant 0 : index
    %90 = vector.load %arg3[%c1_61, %c0_62, %c0_63] : memref<8x2x32xf32, #tpu.memory_space<vmem>>, vector<1x2x32xf32>
    %91 = vector.shape_cast %90 : vector<1x2x32xf32> to vector<2x32xf32>
    %92 = vector.shape_cast %89 : vector<2x32xf32> to vector<1x2x32xf32>
    tpu.vector_store %arg3[%c1_61, %c0_62, %c0_63], %92 {strides = array<i32>} : memref<8x2x32xf32, #tpu.memory_space<vmem>>, vector<1x2x32xf32>,
    %c0_64 = arith.constant 0 : index
    %c2_65 = arith.constant 2 : index
    %c0_66 = arith.constant 0 : index
    %c0_67 = arith.constant 0 : index
    %93 = vector.load %arg1[%c0_64, %c2_65, %c0_66, %c0_67] : memref<4x8x2x32xf32, #tpu.memory_space<vmem>>, vector<1x1x2x32xf32>
    %94 = vector.shape_cast %93 : vector<1x1x2x32xf32> to vector<2x32xf32>
    %cst_68 = arith.constant dense<0.000000e+00> : vector<2x32xf32>
    %95 = tpu.matmul %89, %6, %cst_68 {dimension_numbers = #tpu.dot_dimension_numbers<[1], [0], [0], [1], [0, 0, 1, 1], [], []>} : vector<2x32xf32>, vector<32x32xf32>, vector<2x32xf32> -> vector<2x32xf32>
    %96 = arith.addf %94, %95 : vector<2x32xf32>
    %97 = arith.negf %96 : vector<2x32xf32>
    %98 = math.exp %97 : vector<2x32xf32>
    %cst_69 = arith.constant 1.000000e+00 : f32
    %99 = vector.broadcast %cst_69 : f32 to vector<2x32xf32>
    %100 = arith.addf %99, %98 : vector<2x32xf32>
    %101 = arith.divf %99, %100 : vector<2x32xf32>
    %c1_70 = arith.constant 1 : index
    %c2_71 = arith.constant 2 : index
    %c0_72 = arith.constant 0 : index
    %c0_73 = arith.constant 0 : index
    %102 = vector.load %arg1[%c1_70, %c2_71, %c0_72, %c0_73] : memref<4x8x2x32xf32, #tpu.memory_space<vmem>>, vector<1x1x2x32xf32>
    %103 = vector.shape_cast %102 : vector<1x1x2x32xf32> to vector<2x32xf32>
    %cst_74 = arith.constant dense<0.000000e+00> : vector<2x32xf32>
    %104 = tpu.matmul %89, %8, %cst_74 {dimension_numbers = #tpu.dot_dimension_numbers<[1], [0], [0], [1], [0, 0, 1, 1], [], []>} : vector<2x32xf32>, vector<32x32xf32>, vector<2x32xf32> -> vector<2x32xf32>
    %105 = arith.addf %103, %104 : vector<2x32xf32>
    %106 = arith.negf %105 : vector<2x32xf32>
    %107 = math.exp %106 : vector<2x32xf32>
    %cst_75 = arith.constant 1.000000e+00 : f32
    %108 = vector.broadcast %cst_75 : f32 to vector<2x32xf32>
    %109 = arith.addf %108, %107 : vector<2x32xf32>
    %110 = arith.divf %108, %109 : vector<2x32xf32>
    %c2_76 = arith.constant 2 : index
    %c2_77 = arith.constant 2 : index
    %c0_78 = arith.constant 0 : index
    %c0_79 = arith.constant 0 : index
    %111 = vector.load %arg1[%c2_76, %c2_77, %c0_78, %c0_79] : memref<4x8x2x32xf32, #tpu.memory_space<vmem>>, vector<1x1x2x32xf32>
    %112 = vector.shape_cast %111 : vector<1x1x2x32xf32> to vector<2x32xf32>
    %cst_80 = arith.constant dense<0.000000e+00> : vector<2x32xf32>
    %113 = tpu.matmul %89, %10, %cst_80 {dimension_numbers = #tpu.dot_dimension_numbers<[1], [0], [0], [1], [0, 0, 1, 1], [], []>} : vector<2x32xf32>, vector<32x32xf32>, vector<2x32xf32> -> vector<2x32xf32>
    %114 = arith.addf %112, %113 : vector<2x32xf32>
    %115 = math.tanh %114 : vector<2x32xf32>
    %c3_81 = arith.constant 3 : index
    %c2_82 = arith.constant 2 : index
    %c0_83 = arith.constant 0 : index
    %c0_84 = arith.constant 0 : index
    %116 = vector.load %arg1[%c3_81, %c2_82, %c0_83, %c0_84] : memref<4x8x2x32xf32, #tpu.memory_space<vmem>>, vector<1x1x2x32xf32>
    %117 = vector.shape_cast %116 : vector<1x1x2x32xf32> to vector<2x32xf32>
    %cst_85 = arith.constant dense<0.000000e+00> : vector<2x32xf32>
    %118 = tpu.matmul %89, %12, %cst_85 {dimension_numbers = #tpu.dot_dimension_numbers<[1], [0], [0], [1], [0, 0, 1, 1], [], []>} : vector<2x32xf32>, vector<32x32xf32>, vector<2x32xf32> -> vector<2x32xf32>
    %119 = arith.addf %117, %118 : vector<2x32xf32>
    %120 = arith.negf %119 : vector<2x32xf32>
    %121 = math.exp %120 : vector<2x32xf32>
    %cst_86 = arith.constant 1.000000e+00 : f32
    %122 = vector.broadcast %cst_86 : f32 to vector<2x32xf32>
    %123 = arith.addf %122, %121 : vector<2x32xf32>
    %124 = arith.divf %122, %123 : vector<2x32xf32>
    %125 = arith.mulf %110, %87 : vector<2x32xf32>
    %126 = arith.mulf %101, %115 : vector<2x32xf32>
    %127 = arith.addf %125, %126 : vector<2x32xf32>
    %128 = math.tanh %127 : vector<2x32xf32>
    %129 = arith.mulf %124, %128 : vector<2x32xf32>
    %c2_87 = arith.constant 2 : index
    %c0_88 = arith.constant 0 : index
    %c0_89 = arith.constant 0 : index
    %130 = vector.load %arg3[%c2_87, %c0_88, %c0_89] : memref<8x2x32xf32, #tpu.memory_space<vmem>>, vector<1x2x32xf32>
    %131 = vector.shape_cast %130 : vector<1x2x32xf32> to vector<2x32xf32>
    %132 = vector.shape_cast %129 : vector<2x32xf32> to vector<1x2x32xf32>
    tpu.vector_store %arg3[%c2_87, %c0_88, %c0_89], %132 {strides = array<i32>} : memref<8x2x32xf32, #tpu.memory_space<vmem>>, vector<1x2x32xf32>,
    %c0_90 = arith.constant 0 : index
    %c3_91 = arith.constant 3 : index
    %c0_92 = arith.constant 0 : index
    %c0_93 = arith.constant 0 : index
    %133 = vector.load %arg1[%c0_90, %c3_91, %c0_92, %c0_93] : memref<4x8x2x32xf32, #tpu.memory_space<vmem>>, vector<1x1x2x32xf32>
    %134 = vector.shape_cast %133 : vector<1x1x2x32xf32> to vector<2x32xf32>
    %cst_94 = arith.constant dense<0.000000e+00> : vector<2x32xf32>
    %135 = tpu.matmul %129, %6, %cst_94 {dimension_numbers = #tpu.dot_dimension_numbers<[1], [0], [0], [1], [0, 0, 1, 1], [], []>} : vector<2x32xf32>, vector<32x32xf32>, vector<2x32xf32> -> vector<2x32xf32>
    %136 = arith.addf %134, %135 : vector<2x32xf32>
    %137 = arith.negf %136 : vector<2x32xf32>
    %138 = math.exp %137 : vector<2x32xf32>
    %cst_95 = arith.constant 1.000000e+00 : f32
    %139 = vector.broadcast %cst_95 : f32 to vector<2x32xf32>
    %140 = arith.addf %139, %138 : vector<2x32xf32>
    %141 = arith.divf %139, %140 : vector<2x32xf32>
    %c1_96 = arith.constant 1 : index
    %c3_97 = arith.constant 3 : index
    %c0_98 = arith.constant 0 : index
    %c0_99 = arith.constant 0 : index
    %142 = vector.load %arg1[%c1_96, %c3_97, %c0_98, %c0_99] : memref<4x8x2x32xf32, #tpu.memory_space<vmem>>, vector<1x1x2x32xf32>
    %143 = vector.shape_cast %142 : vector<1x1x2x32xf32> to vector<2x32xf32>
    %cst_100 = arith.constant dense<0.000000e+00> : vector<2x32xf32>
    %144 = tpu.matmul %129, %8, %cst_100 {dimension_numbers = #tpu.dot_dimension_numbers<[1], [0], [0], [1], [0, 0, 1, 1], [], []>} : vector<2x32xf32>, vector<32x32xf32>, vector<2x32xf32> -> vector<2x32xf32>
    %145 = arith.addf %143, %144 : vector<2x32xf32>
    %146 = arith.negf %145 : vector<2x32xf32>
    %147 = math.exp %146 : vector<2x32xf32>
    %cst_101 = arith.constant 1.000000e+00 : f32
    %148 = vector.broadcast %cst_101 : f32 to vector<2x32xf32>
    %149 = arith.addf %148, %147 : vector<2x32xf32>
    %150 = arith.divf %148, %149 : vector<2x32xf32>
    %c2_102 = arith.constant 2 : index
    %c3_103 = arith.constant 3 : index
    %c0_104 = arith.constant 0 : index
    %c0_105 = arith.constant 0 : index
    %151 = vector.load %arg1[%c2_102, %c3_103, %c0_104, %c0_105] : memref<4x8x2x32xf32, #tpu.memory_space<vmem>>, vector<1x1x2x32xf32>
    %152 = vector.shape_cast %151 : vector<1x1x2x32xf32> to vector<2x32xf32>
    %cst_106 = arith.constant dense<0.000000e+00> : vector<2x32xf32>
    %153 = tpu.matmul %129, %10, %cst_106 {dimension_numbers = #tpu.dot_dimension_numbers<[1], [0], [0], [1], [0, 0, 1, 1], [], []>} : vector<2x32xf32>, vector<32x32xf32>, vector<2x32xf32> -> vector<2x32xf32>
    %154 = arith.addf %152, %153 : vector<2x32xf32>
    %155 = math.tanh %154 : vector<2x32xf32>
    %c3_107 = arith.constant 3 : index
    %c3_108 = arith.constant 3 : index
    %c0_109 = arith.constant 0 : index
    %c0_110 = arith.constant 0 : index
    %156 = vector.load %arg1[%c3_107, %c3_108, %c0_109, %c0_110] : memref<4x8x2x32xf32, #tpu.memory_space<vmem>>, vector<1x1x2x32xf32>
    %157 = vector.shape_cast %156 : vector<1x1x2x32xf32> to vector<2x32xf32>
    %cst_111 = arith.constant dense<0.000000e+00> : vector<2x32xf32>
    %158 = tpu.matmul %129, %12, %cst_111 {dimension_numbers = #tpu.dot_dimension_numbers<[1], [0], [0], [1], [0, 0, 1, 1], [], []>} : vector<2x32xf32>, vector<32x32xf32>, vector<2x32xf32> -> vector<2x32xf32>
    %159 = arith.addf %157, %158 : vector<2x32xf32>
    %160 = arith.negf %159 : vector<2x32xf32>
    %161 = math.exp %160 : vector<2x32xf32>
    %cst_112 = arith.constant 1.000000e+00 : f32
    %162 = vector.broadcast %cst_112 : f32 to vector<2x32xf32>
    %163 = arith.addf %162, %161 : vector<2x32xf32>
    %164 = arith.divf %162, %163 : vector<2x32xf32>
    %165 = arith.mulf %150, %127 : vector<2x32xf32>
    %166 = arith.mulf %141, %155 : vector<2x32xf32>
    %167 = arith.addf %165, %166 : vector<2x32xf32>
    %168 = math.tanh %167 : vector<2x32xf32>
    %169 = arith.mulf %164, %168 : vector<2x32xf32>
    %c3_113 = arith.constant 3 : index
    %c0_114 = arith.constant 0 : index
    %c0_115 = arith.constant 0 : index
    %170 = vector.load %arg3[%c3_113, %c0_114, %c0_115] : memref<8x2x32xf32, #tpu.memory_space<vmem>>, vector<1x2x32xf32>
    %171 = vector.shape_cast %170 : vector<1x2x32xf32> to vector<2x32xf32>
    %172 = vector.shape_cast %169 : vector<2x32xf32> to vector<1x2x32xf32>
    tpu.vector_store %arg3[%c3_113, %c0_114, %c0_115], %172 {strides = array<i32>} : memref<8x2x32xf32, #tpu.memory_space<vmem>>, vector<1x2x32xf32>,
    %c0_116 = arith.constant 0 : index
    %c4 = arith.constant 4 : index
    %c0_117 = arith.constant 0 : index
    %c0_118 = arith.constant 0 : index
    %173 = vector.load %arg1[%c0_116, %c4, %c0_117, %c0_118] : memref<4x8x2x32xf32, #tpu.memory_space<vmem>>, vector<1x1x2x32xf32>
    %174 = vector.shape_cast %173 : vector<1x1x2x32xf32> to vector<2x32xf32>
    %cst_119 = arith.constant dense<0.000000e+00> : vector<2x32xf32>
    %175 = tpu.matmul %169, %6, %cst_119 {dimension_numbers = #tpu.dot_dimension_numbers<[1], [0], [0], [1], [0, 0, 1, 1], [], []>} : vector<2x32xf32>, vector<32x32xf32>, vector<2x32xf32> -> vector<2x32xf32>
    %176 = arith.addf %174, %175 : vector<2x32xf32>
    %177 = arith.negf %176 : vector<2x32xf32>
    %178 = math.exp %177 : vector<2x32xf32>
    %cst_120 = arith.constant 1.000000e+00 : f32
    %179 = vector.broadcast %cst_120 : f32 to vector<2x32xf32>
    %180 = arith.addf %179, %178 : vector<2x32xf32>
    %181 = arith.divf %179, %180 : vector<2x32xf32>
    %c1_121 = arith.constant 1 : index
    %c4_122 = arith.constant 4 : index
    %c0_123 = arith.constant 0 : index
    %c0_124 = arith.constant 0 : index
    %182 = vector.load %arg1[%c1_121, %c4_122, %c0_123, %c0_124] : memref<4x8x2x32xf32, #tpu.memory_space<vmem>>, vector<1x1x2x32xf32>
    %183 = vector.shape_cast %182 : vector<1x1x2x32xf32> to vector<2x32xf32>
    %cst_125 = arith.constant dense<0.000000e+00> : vector<2x32xf32>
    %184 = tpu.matmul %169, %8, %cst_125 {dimension_numbers = #tpu.dot_dimension_numbers<[1], [0], [0], [1], [0, 0, 1, 1], [], []>} : vector<2x32xf32>, vector<32x32xf32>, vector<2x32xf32> -> vector<2x32xf32>
    %185 = arith.addf %183, %184 : vector<2x32xf32>
    %186 = arith.negf %185 : vector<2x32xf32>
    %187 = math.exp %186 : vector<2x32xf32>
    %cst_126 = arith.constant 1.000000e+00 : f32
    %188 = vector.broadcast %cst_126 : f32 to vector<2x32xf32>
    %189 = arith.addf %188, %187 : vector<2x32xf32>
    %190 = arith.divf %188, %189 : vector<2x32xf32>
    %c2_127 = arith.constant 2 : index
    %c4_128 = arith.constant 4 : index
    %c0_129 = arith.constant 0 : index
    %c0_130 = arith.constant 0 : index
    %191 = vector.load %arg1[%c2_127, %c4_128, %c0_129, %c0_130] : memref<4x8x2x32xf32, #tpu.memory_space<vmem>>, vector<1x1x2x32xf32>
    %192 = vector.shape_cast %191 : vector<1x1x2x32xf32> to vector<2x32xf32>
    %cst_131 = arith.constant dense<0.000000e+00> : vector<2x32xf32>
    %193 = tpu.matmul %169, %10, %cst_131 {dimension_numbers = #tpu.dot_dimension_numbers<[1], [0], [0], [1], [0, 0, 1, 1], [], []>} : vector<2x32xf32>, vector<32x32xf32>, vector<2x32xf32> -> vector<2x32xf32>
    %194 = arith.addf %192, %193 : vector<2x32xf32>
    %195 = math.tanh %194 : vector<2x32xf32>
    %c3_132 = arith.constant 3 : index
    %c4_133 = arith.constant 4 : index
    %c0_134 = arith.constant 0 : index
    %c0_135 = arith.constant 0 : index
    %196 = vector.load %arg1[%c3_132, %c4_133, %c0_134, %c0_135] : memref<4x8x2x32xf32, #tpu.memory_space<vmem>>, vector<1x1x2x32xf32>
    %197 = vector.shape_cast %196 : vector<1x1x2x32xf32> to vector<2x32xf32>
    %cst_136 = arith.constant dense<0.000000e+00> : vector<2x32xf32>
    %198 = tpu.matmul %169, %12, %cst_136 {dimension_numbers = #tpu.dot_dimension_numbers<[1], [0], [0], [1], [0, 0, 1, 1], [], []>} : vector<2x32xf32>, vector<32x32xf32>, vector<2x32xf32> -> vector<2x32xf32>
    %199 = arith.addf %197, %198 : vector<2x32xf32>
    %200 = arith.negf %199 : vector<2x32xf32>
    %201 = math.exp %200 : vector<2x32xf32>
    %cst_137 = arith.constant 1.000000e+00 : f32
    %202 = vector.broadcast %cst_137 : f32 to vector<2x32xf32>
    %203 = arith.addf %202, %201 : vector<2x32xf32>
    %204 = arith.divf %202, %203 : vector<2x32xf32>
    %205 = arith.mulf %190, %167 : vector<2x32xf32>
    %206 = arith.mulf %181, %195 : vector<2x32xf32>
    %207 = arith.addf %205, %206 : vector<2x32xf32>
    %208 = math.tanh %207 : vector<2x32xf32>
    %209 = arith.mulf %204, %208 : vector<2x32xf32>
    %c4_138 = arith.constant 4 : index
    %c0_139 = arith.constant 0 : index
    %c0_140 = arith.constant 0 : index
    %210 = vector.load %arg3[%c4_138, %c0_139, %c0_140] : memref<8x2x32xf32, #tpu.memory_space<vmem>>, vector<1x2x32xf32>
    %211 = vector.shape_cast %210 : vector<1x2x32xf32> to vector<2x32xf32>
    %212 = vector.shape_cast %209 : vector<2x32xf32> to vector<1x2x32xf32>
    tpu.vector_store %arg3[%c4_138, %c0_139, %c0_140], %212 {strides = array<i32>} : memref<8x2x32xf32, #tpu.memory_space<vmem>>, vector<1x2x32xf32>,
    %c0_141 = arith.constant 0 : index
    %c5 = arith.constant 5 : index
    %c0_142 = arith.constant 0 : index
    %c0_143 = arith.constant 0 : index
    %213 = vector.load %arg1[%c0_141, %c5, %c0_142, %c0_143] : memref<4x8x2x32xf32, #tpu.memory_space<vmem>>, vector<1x1x2x32xf32>
    %214 = vector.shape_cast %213 : vector<1x1x2x32xf32> to vector<2x32xf32>
    %cst_144 = arith.constant dense<0.000000e+00> : vector<2x32xf32>
    %215 = tpu.matmul %209, %6, %cst_144 {dimension_numbers = #tpu.dot_dimension_numbers<[1], [0], [0], [1], [0, 0, 1, 1], [], []>} : vector<2x32xf32>, vector<32x32xf32>, vector<2x32xf32> -> vector<2x32xf32>
    %216 = arith.addf %214, %215 : vector<2x32xf32>
    %217 = arith.negf %216 : vector<2x32xf32>
    %218 = math.exp %217 : vector<2x32xf32>
    %cst_145 = arith.constant 1.000000e+00 : f32
    %219 = vector.broadcast %cst_145 : f32 to vector<2x32xf32>
    %220 = arith.addf %219, %218 : vector<2x32xf32>
    %221 = arith.divf %219, %220 : vector<2x32xf32>
    %c1_146 = arith.constant 1 : index
    %c5_147 = arith.constant 5 : index
    %c0_148 = arith.constant 0 : index
    %c0_149 = arith.constant 0 : index
    %222 = vector.load %arg1[%c1_146, %c5_147, %c0_148, %c0_149] : memref<4x8x2x32xf32, #tpu.memory_space<vmem>>, vector<1x1x2x32xf32>
    %223 = vector.shape_cast %222 : vector<1x1x2x32xf32> to vector<2x32xf32>
    %cst_150 = arith.constant dense<0.000000e+00> : vector<2x32xf32>
    %224 = tpu.matmul %209, %8, %cst_150 {dimension_numbers = #tpu.dot_dimension_numbers<[1], [0], [0], [1], [0, 0, 1, 1], [], []>} : vector<2x32xf32>, vector<32x32xf32>, vector<2x32xf32> -> vector<2x32xf32>
    %225 = arith.addf %223, %224 : vector<2x32xf32>
    %226 = arith.negf %225 : vector<2x32xf32>
    %227 = math.exp %226 : vector<2x32xf32>
    %cst_151 = arith.constant 1.000000e+00 : f32
    %228 = vector.broadcast %cst_151 : f32 to vector<2x32xf32>
    %229 = arith.addf %228, %227 : vector<2x32xf32>
    %230 = arith.divf %228, %229 : vector<2x32xf32>
    %c2_152 = arith.constant 2 : index
    %c5_153 = arith.constant 5 : index
    %c0_154 = arith.constant 0 : index
    %c0_155 = arith.constant 0 : index
    %231 = vector.load %arg1[%c2_152, %c5_153, %c0_154, %c0_155] : memref<4x8x2x32xf32, #tpu.memory_space<vmem>>, vector<1x1x2x32xf32>
    %232 = vector.shape_cast %231 : vector<1x1x2x32xf32> to vector<2x32xf32>
    %cst_156 = arith.constant dense<0.000000e+00> : vector<2x32xf32>
    %233 = tpu.matmul %209, %10, %cst_156 {dimension_numbers = #tpu.dot_dimension_numbers<[1], [0], [0], [1], [0, 0, 1, 1], [], []>} : vector<2x32xf32>, vector<32x32xf32>, vector<2x32xf32> -> vector<2x32xf32>
    %234 = arith.addf %232, %233 : vector<2x32xf32>
    %235 = math.tanh %234 : vector<2x32xf32>
    %c3_157 = arith.constant 3 : index
    %c5_158 = arith.constant 5 : index
    %c0_159 = arith.constant 0 : index
    %c0_160 = arith.constant 0 : index
    %236 = vector.load %arg1[%c3_157, %c5_158, %c0_159, %c0_160] : memref<4x8x2x32xf32, #tpu.memory_space<vmem>>, vector<1x1x2x32xf32>
    %237 = vector.shape_cast %236 : vector<1x1x2x32xf32> to vector<2x32xf32>
    %cst_161 = arith.constant dense<0.000000e+00> : vector<2x32xf32>
    %238 = tpu.matmul %209, %12, %cst_161 {dimension_numbers = #tpu.dot_dimension_numbers<[1], [0], [0], [1], [0, 0, 1, 1], [], []>} : vector<2x32xf32>, vector<32x32xf32>, vector<2x32xf32> -> vector<2x32xf32>
    %239 = arith.addf %237, %238 : vector<2x32xf32>
    %240 = arith.negf %239 : vector<2x32xf32>
    %241 = math.exp %240 : vector<2x32xf32>
    %cst_162 = arith.constant 1.000000e+00 : f32
    %242 = vector.broadcast %cst_162 : f32 to vector<2x32xf32>
    %243 = arith.addf %242, %241 : vector<2x32xf32>
    %244 = arith.divf %242, %243 : vector<2x32xf32>
    %245 = arith.mulf %230, %207 : vector<2x32xf32>
    %246 = arith.mulf %221, %235 : vector<2x32xf32>
    %247 = arith.addf %245, %246 : vector<2x32xf32>
    %248 = math.tanh %247 : vector<2x32xf32>
    %249 = arith.mulf %244, %248 : vector<2x32xf32>
    %c5_163 = arith.constant 5 : index
    %c0_164 = arith.constant 0 : index
    %c0_165 = arith.constant 0 : index
    %250 = vector.load %arg3[%c5_163, %c0_164, %c0_165] : memref<8x2x32xf32, #tpu.memory_space<vmem>>, vector<1x2x32xf32>
    %251 = vector.shape_cast %250 : vector<1x2x32xf32> to vector<2x32xf32>
    %252 = vector.shape_cast %249 : vector<2x32xf32> to vector<1x2x32xf32>
    tpu.vector_store %arg3[%c5_163, %c0_164, %c0_165], %252 {strides = array<i32>} : memref<8x2x32xf32, #tpu.memory_space<vmem>>, vector<1x2x32xf32>,
    %c0_166 = arith.constant 0 : index
    %c6 = arith.constant 6 : index
    %c0_167 = arith.constant 0 : index
    %c0_168 = arith.constant 0 : index
    %253 = vector.load %arg1[%c0_166, %c6, %c0_167, %c0_168] : memref<4x8x2x32xf32, #tpu.memory_space<vmem>>, vector<1x1x2x32xf32>
    %254 = vector.shape_cast %253 : vector<1x1x2x32xf32> to vector<2x32xf32>
    %cst_169 = arith.constant dense<0.000000e+00> : vector<2x32xf32>
    %255 = tpu.matmul %249, %6, %cst_169 {dimension_numbers = #tpu.dot_dimension_numbers<[1], [0], [0], [1], [0, 0, 1, 1], [], []>} : vector<2x32xf32>, vector<32x32xf32>, vector<2x32xf32> -> vector<2x32xf32>
    %256 = arith.addf %254, %255 : vector<2x32xf32>
    %257 = arith.negf %256 : vector<2x32xf32>
    %258 = math.exp %257 : vector<2x32xf32>
    %cst_170 = arith.constant 1.000000e+00 : f32
    %259 = vector.broadcast %cst_170 : f32 to vector<2x32xf32>
    %260 = arith.addf %259, %258 : vector<2x32xf32>
    %261 = arith.divf %259, %260 : vector<2x32xf32>
    %c1_171 = arith.constant 1 : index
    %c6_172 = arith.constant 6 : index
    %c0_173 = arith.constant 0 : index
    %c0_174 = arith.constant 0 : index
    %262 = vector.load %arg1[%c1_171, %c6_172, %c0_173, %c0_174] : memref<4x8x2x32xf32, #tpu.memory_space<vmem>>, vector<1x1x2x32xf32>
    %263 = vector.shape_cast %262 : vector<1x1x2x32xf32> to vector<2x32xf32>
    %cst_175 = arith.constant dense<0.000000e+00> : vector<2x32xf32>
    %264 = tpu.matmul %249, %8, %cst_175 {dimension_numbers = #tpu.dot_dimension_numbers<[1], [0], [0], [1], [0, 0, 1, 1], [], []>} : vector<2x32xf32>, vector<32x32xf32>, vector<2x32xf32> -> vector<2x32xf32>
    %265 = arith.addf %263, %264 : vector<2x32xf32>
    %266 = arith.negf %265 : vector<2x32xf32>
    %267 = math.exp %266 : vector<2x32xf32>
    %cst_176 = arith.constant 1.000000e+00 : f32
    %268 = vector.broadcast %cst_176 : f32 to vector<2x32xf32>
    %269 = arith.addf %268, %267 : vector<2x32xf32>
    %270 = arith.divf %268, %269 : vector<2x32xf32>
    %c2_177 = arith.constant 2 : index
    %c6_178 = arith.constant 6 : index
    %c0_179 = arith.constant 0 : index
    %c0_180 = arith.constant 0 : index
    %271 = vector.load %arg1[%c2_177, %c6_178, %c0_179, %c0_180] : memref<4x8x2x32xf32, #tpu.memory_space<vmem>>, vector<1x1x2x32xf32>
    %272 = vector.shape_cast %271 : vector<1x1x2x32xf32> to vector<2x32xf32>
    %cst_181 = arith.constant dense<0.000000e+00> : vector<2x32xf32>
    %273 = tpu.matmul %249, %10, %cst_181 {dimension_numbers = #tpu.dot_dimension_numbers<[1], [0], [0], [1], [0, 0, 1, 1], [], []>} : vector<2x32xf32>, vector<32x32xf32>, vector<2x32xf32> -> vector<2x32xf32>
    %274 = arith.addf %272, %273 : vector<2x32xf32>
    %275 = math.tanh %274 : vector<2x32xf32>
    %c3_182 = arith.constant 3 : index
    %c6_183 = arith.constant 6 : index
    %c0_184 = arith.constant 0 : index
    %c0_185 = arith.constant 0 : index
    %276 = vector.load %arg1[%c3_182, %c6_183, %c0_184, %c0_185] : memref<4x8x2x32xf32, #tpu.memory_space<vmem>>, vector<1x1x2x32xf32>
    %277 = vector.shape_cast %276 : vector<1x1x2x32xf32> to vector<2x32xf32>
    %cst_186 = arith.constant dense<0.000000e+00> : vector<2x32xf32>
    %278 = tpu.matmul %249, %12, %cst_186 {dimension_numbers = #tpu.dot_dimension_numbers<[1], [0], [0], [1], [0, 0, 1, 1], [], []>} : vector<2x32xf32>, vector<32x32xf32>, vector<2x32xf32> -> vector<2x32xf32>
    %279 = arith.addf %277, %278 : vector<2x32xf32>
    %280 = arith.negf %279 : vector<2x32xf32>
    %281 = math.exp %280 : vector<2x32xf32>
    %cst_187 = arith.constant 1.000000e+00 : f32
    %282 = vector.broadcast %cst_187 : f32 to vector<2x32xf32>
    %283 = arith.addf %282, %281 : vector<2x32xf32>
    %284 = arith.divf %282, %283 : vector<2x32xf32>
    %285 = arith.mulf %270, %247 : vector<2x32xf32>
    %286 = arith.mulf %261, %275 : vector<2x32xf32>
    %287 = arith.addf %285, %286 : vector<2x32xf32>
    %288 = math.tanh %287 : vector<2x32xf32>
    %289 = arith.mulf %284, %288 : vector<2x32xf32>
    %c6_188 = arith.constant 6 : index
    %c0_189 = arith.constant 0 : index
    %c0_190 = arith.constant 0 : index
    %290 = vector.load %arg3[%c6_188, %c0_189, %c0_190] : memref<8x2x32xf32, #tpu.memory_space<vmem>>, vector<1x2x32xf32>
    %291 = vector.shape_cast %290 : vector<1x2x32xf32> to vector<2x32xf32>
    %292 = vector.shape_cast %289 : vector<2x32xf32> to vector<1x2x32xf32>
    tpu.vector_store %arg3[%c6_188, %c0_189, %c0_190], %292 {strides = array<i32>} : memref<8x2x32xf32, #tpu.memory_space<vmem>>, vector<1x2x32xf32>,
    %c0_191 = arith.constant 0 : index
    %c7 = arith.constant 7 : index
    %c0_192 = arith.constant 0 : index
    %c0_193 = arith.constant 0 : index
    %293 = vector.load %arg1[%c0_191, %c7, %c0_192, %c0_193] : memref<4x8x2x32xf32, #tpu.memory_space<vmem>>, vector<1x1x2x32xf32>
    %294 = vector.shape_cast %293 : vector<1x1x2x32xf32> to vector<2x32xf32>
    %cst_194 = arith.constant dense<0.000000e+00> : vector<2x32xf32>
    %295 = tpu.matmul %289, %6, %cst_194 {dimension_numbers = #tpu.dot_dimension_numbers<[1], [0], [0], [1], [0, 0, 1, 1], [], []>} : vector<2x32xf32>, vector<32x32xf32>, vector<2x32xf32> -> vector<2x32xf32>
    %296 = arith.addf %294, %295 : vector<2x32xf32>
    %297 = arith.negf %296 : vector<2x32xf32>
    %298 = math.exp %297 : vector<2x32xf32>
    %cst_195 = arith.constant 1.000000e+00 : f32
    %299 = vector.broadcast %cst_195 : f32 to vector<2x32xf32>
    %300 = arith.addf %299, %298 : vector<2x32xf32>
    %301 = arith.divf %299, %300 : vector<2x32xf32>
    %c1_196 = arith.constant 1 : index
    %c7_197 = arith.constant 7 : index
    %c0_198 = arith.constant 0 : index
    %c0_199 = arith.constant 0 : index
    %302 = vector.load %arg1[%c1_196, %c7_197, %c0_198, %c0_199] : memref<4x8x2x32xf32, #tpu.memory_space<vmem>>, vector<1x1x2x32xf32>
    %303 = vector.shape_cast %302 : vector<1x1x2x32xf32> to vector<2x32xf32>
    %cst_200 = arith.constant dense<0.000000e+00> : vector<2x32xf32>
    %304 = tpu.matmul %289, %8, %cst_200 {dimension_numbers = #tpu.dot_dimension_numbers<[1], [0], [0], [1], [0, 0, 1, 1], [], []>} : vector<2x32xf32>, vector<32x32xf32>, vector<2x32xf32> -> vector<2x32xf32>
    %305 = arith.addf %303, %304 : vector<2x32xf32>
    %306 = arith.negf %305 : vector<2x32xf32>
    %307 = math.exp %306 : vector<2x32xf32>
    %cst_201 = arith.constant 1.000000e+00 : f32
    %308 = vector.broadcast %cst_201 : f32 to vector<2x32xf32>
    %309 = arith.addf %308, %307 : vector<2x32xf32>
    %310 = arith.divf %308, %309 : vector<2x32xf32>
    %c2_202 = arith.constant 2 : index
    %c7_203 = arith.constant 7 : index
    %c0_204 = arith.constant 0 : index
    %c0_205 = arith.constant 0 : index
    %311 = vector.load %arg1[%c2_202, %c7_203, %c0_204, %c0_205] : memref<4x8x2x32xf32, #tpu.memory_space<vmem>>, vector<1x1x2x32xf32>
    %312 = vector.shape_cast %311 : vector<1x1x2x32xf32> to vector<2x32xf32>
    %cst_206 = arith.constant dense<0.000000e+00> : vector<2x32xf32>
    %313 = tpu.matmul %289, %10, %cst_206 {dimension_numbers = #tpu.dot_dimension_numbers<[1], [0], [0], [1], [0, 0, 1, 1], [], []>} : vector<2x32xf32>, vector<32x32xf32>, vector<2x32xf32> -> vector<2x32xf32>
    %314 = arith.addf %312, %313 : vector<2x32xf32>
    %315 = math.tanh %314 : vector<2x32xf32>
    %c3_207 = arith.constant 3 : index
    %c7_208 = arith.constant 7 : index
    %c0_209 = arith.constant 0 : index
    %c0_210 = arith.constant 0 : index
    %316 = vector.load %arg1[%c3_207, %c7_208, %c0_209, %c0_210] : memref<4x8x2x32xf32, #tpu.memory_space<vmem>>, vector<1x1x2x32xf32>
    %317 = vector.shape_cast %316 : vector<1x1x2x32xf32> to vector<2x32xf32>
    %cst_211 = arith.constant dense<0.000000e+00> : vector<2x32xf32>
    %318 = tpu.matmul %289, %12, %cst_211 {dimension_numbers = #tpu.dot_dimension_numbers<[1], [0], [0], [1], [0, 0, 1, 1], [], []>} : vector<2x32xf32>, vector<32x32xf32>, vector<2x32xf32> -> vector<2x32xf32>
    %319 = arith.addf %317, %318 : vector<2x32xf32>
    %320 = arith.negf %319 : vector<2x32xf32>
    %321 = math.exp %320 : vector<2x32xf32>
    %cst_212 = arith.constant 1.000000e+00 : f32
    %322 = vector.broadcast %cst_212 : f32 to vector<2x32xf32>
    %323 = arith.addf %322, %321 : vector<2x32xf32>
    %324 = arith.divf %322, %323 : vector<2x32xf32>
    %325 = arith.mulf %310, %287 : vector<2x32xf32>
    %326 = arith.mulf %301, %315 : vector<2x32xf32>
    %327 = arith.addf %325, %326 : vector<2x32xf32>
    %328 = math.tanh %327 : vector<2x32xf32>
    %329 = arith.mulf %324, %328 : vector<2x32xf32>
    %c7_213 = arith.constant 7 : index
    %c0_214 = arith.constant 0 : index
    %c0_215 = arith.constant 0 : index
    %330 = vector.load %arg3[%c7_213, %c0_214, %c0_215] : memref<8x2x32xf32, #tpu.memory_space<vmem>>, vector<1x2x32xf32>
    %331 = vector.shape_cast %330 : vector<1x2x32xf32> to vector<2x32xf32>
    %332 = vector.shape_cast %329 : vector<2x32xf32> to vector<1x2x32xf32>
    tpu.vector_store %arg3[%c7_213, %c0_214, %c0_215], %332 {strides = array<i32>} : memref<8x2x32xf32, #tpu.memory_space<vmem>>, vector<1x2x32xf32>,
    %c0_216 = arith.constant 0 : index
    %c0_217 = arith.constant 0 : index
    %333 = vector.load %arg6[%c0_216, %c0_217] : memref<2x32xf32, #tpu.memory_space<vmem>>, vector<2x32xf32>
    tpu.vector_store %arg6[%c0_216, %c0_217], %329 {strides = array<i32>} : memref<2x32xf32, #tpu.memory_space<vmem>>, vector<2x32xf32>,
    %c0_218 = arith.constant 0 : index
    %c0_219 = arith.constant 0 : index
    %334 = vector.load %arg7[%c0_218, %c0_219] : memref<2x32xf32, #tpu.memory_space<vmem>>, vector<2x32xf32>
    tpu.vector_store %arg7[%c0_218, %c0_219], %327 {strides = array<i32>} : memref<2x32xf32, #tpu.memory_space<vmem>>, vector<2x32xf32>,
    %c0_i32_220 = arith.constant 0 : i32
    %335 = arith.cmpi eq, %arg0, %c0_i32_220 : i32
    %336 = arith.extui %335 : i1 to i32
    %c0_i32_221 = arith.constant 0 : i32
    %337 = arith.cmpi ne, %336, %c0_i32_221 : i32
    scf.if %337 {
      %c0_222 = arith.constant 0 : index
      %c0_223 = arith.constant 0 : index
      %338 = vector.load %arg4[%c0_222, %c0_223] : memref<2x32xf32, #tpu.memory_space<vmem>>, vector<2x32xf32>
      tpu.vector_store %arg4[%c0_222, %c0_223], %329 {strides = array<i32>} : memref<2x32xf32, #tpu.memory_space<vmem>>, vector<2x32xf32>,
      %c0_224 = arith.constant 0 : index
      %c0_225 = arith.constant 0 : index
      %339 = vector.load %arg5[%c0_224, %c0_225] : memref<2x32xf32, #tpu.memory_space<vmem>>, vector<2x32xf32>
      tpu.vector_store %arg5[%c0_224, %c0_225], %327 {strides = array<i32>} : memref<2x32xf32, #tpu.memory_space<vmem>>, vector<2x32xf32>,
    } else {
    }
    return
  }
  func.func @transform_0(%arg0: i32) -> (i32, i32, i32, i32) {
    %c0_i32 = arith.constant 0 : i32
    %c0_i32_0 = arith.constant 0 : i32
    %c0_i32_1 = arith.constant 0 : i32
    %c0_i32_2 = arith.constant 0 : i32
    return %c0_i32, %arg0, %c0_i32_0, %c0_i32_1 : i32, i32, i32, i32
  }
  func.func @transform_1(%arg0: i32) -> (i32, i32, i32) {
    %c0_i32 = arith.constant 0 : i32
    %c0_i32_0 = arith.constant 0 : i32
    %c0_i32_1 = arith.constant 0 : i32
    %c0_i32_2 = arith.constant 0 : i32
    return %c0_i32, %c0_i32_0, %c0_i32_1 : i32, i32, i32
  }
  func.func @transform_2(%arg0: i32) -> (i32, i32, i32) {
    %c0_i32 = arith.constant 0 : i32
    %c0_i32_0 = arith.constant 0 : i32
    %c0_i32_1 = arith.constant 0 : i32
    return %arg0, %c0_i32, %c0_i32_0 : i32, i32, i32
  }
  func.func @transform_3(%arg0: i32) -> (i32, i32) {
    %c0_i32 = arith.constant 0 : i32
    %c0_i32_0 = arith.constant 0 : i32
    %c0_i32_1 = arith.constant 0 : i32
    return %c0_i32, %c0_i32_0 : i32, i32
  }
  func.func @transform_4(%arg0: i32) -> (i32, i32) {
    %c0_i32 = arith.constant 0 : i32
    %c0_i32_0 = arith.constant 0 : i32
    %c0_i32_1 = arith.constant 0 : i32
    return %c0_i32, %c0_i32_0 : i32, i32
  }
}

</mosaic_0001>

<bundles_post_ra>
// kernel: lstm_forward.5
= control target key start
LH: loop header
LB: loop body
LE: loop exit
PB: predicated region body
PF: predicated region fallthrough
CT: control target
= control target key end

     0   :  { %v40_v3 = vlaneseq  ;;  %v385_v8 = vmov 1983009808   ;;  %s478_s0 = inlined_call_operand.vmem [shape: f32[8,2,32], index: 0, kind: input, shape index: {}]   ;;  %s479_s1 = inlined_call_operand.vmem [shape: f32[32,64], index: 1, kind: input, shape index: {}]   ;;  %s480_s2 = inlined_call_operand.vmem [shape: f32[1,1,64], index: 2, kind: input, shape index: {}]   ;;  %s481_s3 = inlined_call_operand.hbm [shape: f32[2,8,64], index: 3, kind: output, shape index: {}]  }
   0x1   :  { %v23_v0 = vld [vmem:[%s479_s1] sm:$0xff]  ;;  %v24_v1 = vld [vmem:[%s479_s1 + $0x8] sm:$0xff]  ;;  %v25_v2 = vld [vmem:[%s479_s1 + $0x10] sm:$0xff]  ;;  %v38_v9 = vunpack.c.l.s4 %v385_v8 }
   0x2   :  { %v347_v4 = vpack.c.bf16 %v24_v1, %v23_v0  ;;  %v26_v5 = vld [vmem:[%s479_s1 + $0x18] sm:$0xff]  ;;  %v15_v6 = vld [vmem:[%s478_s0] sm:$0x3]  ;;  %v16_v7 = vld [vmem:[%s478_s0 + $0x2] sm:$0x3]  ;;  %v41_v13 = vshrl.u32 %v40_v3, 7 }
   0x3   :  { %v351_v10 = vpack.c.bf16 %v26_v5, %v25_v2  ;;  %v17_v11 = vld [vmem:[%s478_s0 + $0x4] sm:$0x3]  ;;  %v18_v12 = vld [vmem:[%s478_s0 + $0x6] sm:$0x3]  ;;  %v35_v14 = vcombine.low %v15_v6, %v16_v7  ;;  %v39_v16 = vunpack.c.0.s8 %v38_v9  ;;  %v19_v17 = vld [vmem:[%s478_s0 + $0x8] sm:$0x3] }
   0x4   :  { %348 = vmatprep.subr.bf16.mxu0 %v347_v4  ;;  %v36_v15 = vcombine.low %v17_v11, %v18_v12  ;;  %v20_v18 = vld [vmem:[%s478_s0 + $0xa] sm:$0x3]  ;;  %v21_v19 = vld [vmem:[%s478_s0 + $0xc] sm:$0x3]  ;;  %v22_v20 = vld [vmem:[%s478_s0 + $0xe] sm:$0x3] }
   0x5   :  { %350 = vmatpush3.bf16.msra.mxu0 %v347_v4  ;;  %v52_v21 = vcombine.low %v19_v17, %v20_v18 }
   0x6   :  { %8 = vsyncpa [#allocation3], 0  ;;  %352 = vmatprep.subr.bf16.mxu0 %v351_v10  ;;  %v447_v22 = vsub.s32 %v39_v16, %v41_v13  ;;  %v53_v23 = vcombine.low %v21_v19, %v22_v20  ;;  %vm69_vm0 = vcmask 261120   ;;  %v386_v30 = vmov 1934713408  }
   0x7   :  { %v195_v31 = vunpack.c.l.s4 %v386_v30  ;;  %v329_v32 = vld [vmem:[%s480_s2] ss:$0 sm:$0xff]  ;;  %v387_v58 = vmov 0.0   ;;  %s388_s2 = smov [#allocation2]   ;;  %vm308_vm1 = vcmask 523264  }
   0x8   :  { %v43_v24 = vrot.slane %v35_v14, %v447_v22  ;;  %v50_v25 = vrot.slane %v36_v15, %v447_v22  ;;  %v60_v26 = vrot.slane %v52_v21, %v447_v22  ;;  %v67_v27 = vrot.slane %v53_v23, %v447_v22  ;;  %s316_s9 = sshll.u32 %s388_s2, 4  ;;  %s317_s9 = int_to_ptr.vmem [resolvable:$true] %s316_s9 }
   0x9   :  { %354 = vmatpush3.bf16.msra.mxu0 %v351_v10  ;;  %v196_v33 = vunpack.c.0.s8 %v195_v31  ;;  %v235_v34 = vcombine.high %v329_v32, %v329_v32  ;;  %v242_v47 = vrot.slane %v329_v32, %v447_v22  ;;  %s361_s10 = scalar_lea.vmem %s317_s9, 256  ;;  %p366_p1 = scmp.lt.s32.totalorder %s317_s9, %s317_s9 }
   0xa   :  { %v51_v28 = vcombine.low %v43_v24, %v50_v25  ;;  %v68_v29 = vcombine.low %v60_v26, %v67_v27  ;;  %p362_p0 = scmp.ne.s32.totalorder %s317_s9, %s361_s10  ;;  %p367_p2 = scmp.lt.s32.totalorder %s361_s10, %s361_s10 }
   0xb   :  { %v199_v43 = vsub.s32 %v196_v33, %v41_v13  ;;  %v249_v44 = vrot.slane %v235_v34, %v447_v22  ;;  %v250_v57 = vcombine.high %v242_v47, %v242_v47 }
   0xc   :  { %344 = vmatprep.mubr.msk.f32.mxu0 %vm69_vm0, %v51_v28  ;;  %p368_p3 = por %p367_p2, %p366_p1 }
   0xd   :  { %345 = vmatmul.mubr.msk.f32.vlgmr.msra.gmra.mrb[0].mxu0 %vm69_vm0, %v68_v29  ;;  %v251_v54 = vcombine.high %v249_v44, %v249_v44 }
   0xe   :  { %p369_p4 = pnand %p368_p3, %p362_p0 }
  0xe0   :  { %v346_v35 = vpop.f32.mrb[0].mxu0 }
  0xe1   :  { %v168_v36 = vcombine.high %v346_v35, %v346_v35  ;;  %v175_v37 = vrot.slane %v346_v35, %v447_v22  ;;  %v140_v38 = vpop.f32.mrb[1].mxu0 }
  0xe2   :  { %v151_v39 = vcombine.high %v140_v38, %v140_v38  ;;  %v158_v40 = vrot.slane %v140_v38, %v447_v22 }
  0xe3   :  { %v182_v41 = vrot.slane %v168_v36, %v447_v22  ;;  %v183_v42 = vcombine.high %v175_v37, %v175_v37 }
  0xe4   :  { %v165_v45 = vrot.slane %v151_v39, %v447_v22  ;;  %v166_v46 = vcombine.high %v158_v40, %v158_v40 }
  0xe5   :  { %v184_v48 = vcombine.high %v182_v41, %v182_v41  ;;  %v211_v49 = vcombine.low %v175_v37, %v183_v42 }
  0xe6   :  { %v167_v50 = vcombine.high %v165_v45, %v165_v45  ;;  %v193_v51 = vcombine.low %v158_v40, %v166_v46 }
  0xe7   :  { %v218_v52 = vrot.slane %v211_v49, %v199_v43  ;;  %v220_v53 = vcombine.low %v182_v41, %v184_v48 }
  0xe8   :  { %v200_v55 = vrot.slane %v193_v51, %v199_v43  ;;  %v202_v56 = vcombine.low %v165_v45, %v167_v50 }
  0xe9   :  { %v219_v59 = vcombine.high %v218_v52, %v387_v58  ;;  %v227_v60 = vrot.slane %v220_v53, %v199_v43  ;;  %v258_v0 = vadd.f32 %v249_v44, %v218_v52 }
  0xea   :  { %v201_v61 = vcombine.high %v200_v55, %v387_v58  ;;  %v209_v62 = vrot.slane %v202_v56, %v199_v43  ;;  %v256_v3 = vadd.f32 %v242_v47, %v200_v55 }
  0xeb   :  { %v228_v63 = vcombine.high %v227_v60, %v387_v58  ;;  %v259_v1 = vadd.f32 %v251_v54, %v227_v60  ;;  %v262_v5 = vadd.f32 %v249_v44, %v219_v59 }
  0xec   :  { %v210_v2 = vcombine.high %v209_v62, %v387_v58  ;;  %v257_v4 = vadd.f32 %v250_v57, %v209_v62  ;;  %v260_v8 = vadd.f32 %v242_v47, %v201_v61 }
  0xed   :  { %v263_v6 = vadd.f32 %v251_v54, %v228_v63  ;;  %v273_v7 = vcombine.low %v258_v0, %v259_v1 }
  0xee   :  { %v261_v9 = vadd.f32 %v250_v57, %v210_v2  ;;  %v272_v10 = vcombine.low %v256_v3, %v257_v4 }
  0xef   :  { %v287_v11 = vrot.slane %v273_v7, %v447_v22  ;;  %v290_v12 = vcombine.low %v262_v5, %v263_v6 }
  0xf0   :  { %v280_v13 = vrot.slane %v272_v10, %v447_v22  ;;  %v289_v14 = vcombine.low %v260_v8, %v261_v9 }
  0xf1   :  { %v304_v15 = vrot.slane %v290_v12, %v447_v22 }
  0xf2   :  { %v288_v16 = vcombine.low %v280_v13, %v287_v11  ;;  %v297_v17 = vrot.slane %v289_v14, %v447_v22 }
  0xf4   :  { %v305_v18 = vcombine.low %v297_v17, %v304_v15  ;;  %309 = vst.msk [vmem:[#allocation2] sm:$0xff] %vm308_vm1, %v288_v16 }
  0xf6   :  { %310 = vst.msk [vmem:[#allocation2 + $0x8] sm:$0xff] %vm308_vm1, %v305_v18 }
  0xf7   :  { %372 = shalt.err (!%p369_p4)
}
  0xf8   :  { %s373_s13 = scalar_lea.hbm %s481_s3, 256 }
  0xf9   :  { %p374_p5 = scmp.ne.s32.totalorder %s481_s3, %s373_s13  ;;  %p377_p6 = scmp.lt.u32.totalorder %s373_s13, %s481_s3 }
  0xfb   :  { %p379_p7 = pnand %p377_p6, %p374_p5 }
  0xfd   :  { %382 = shalt.err (!%p379_p7)
}
  0xfe   :  { %s389_s18 = smov 128   ;;  %s390_s19 = smov 8  }
  0xff   :  { %322 = dma.vmem_to_hbm [thread:$0]  %s317_s9, 256, %s481_s3, [#allocation3], %s389_s18, %s389_s18, %s390_s19  }
 0x100   :  { %383 = dma.done.wait [#allocation3], 256  }
 0x101   :  { %384 = vsyncadd [#allocation3], 4294967040 }
 0x102   :  { %326 = vsyncpa [#allocation3], 1 }

// kernel: lstm_forward.3
= control target key start
LH: loop header
LB: loop body
LE: loop exit
PB: predicated region body
PF: predicated region fallthrough
CT: control target
= control target key end

     0   :  { %v20_v0 = vlaneseq  ;;  %v881_v4 = vmov 1983009808   ;;  %v882_v6 = vmov 1934713408   ;;  %v883_v24 = vmov 0.0   ;;  %s1142_s1 = inlined_call_operand.vmem [shape: f32[4,32,32], index: 1, kind: input, shape index: {}]   ;;  %s1143_s0 = inlined_call_operand.vmem [shape: f32[2,8,32], index: 0, kind: input, shape index: {}]   ;;  %s1144_s2 = inlined_call_operand.vmem [shape: f32[4,1,32], index: 2, kind: input, shape index: {}]   ;;  %s1145_s3 = inlined_call_operand.vmem [shape: f32[4,8,2,32], index: 3, kind: output, shape index: {}]  }
   0x1   :  { %v82_v1 = vld [vmem:[%s1142_s1] sm:$0xff]  ;;  %v83_v2 = vld [vmem:[%s1142_s1 + $0x8] sm:$0xff]  ;;  %v18_v5 = vunpack.c.l.s4 %v881_v4  ;;  %v49_v7 = vunpack.c.l.s4 %v882_v6  ;;  %v84_v10 = vld [vmem:[%s1142_s1 + $0x10] sm:$0xff]  ;;  %vm128_vm0 = vcmask 261120   ;;  %vm267_vm1 = vcmask 254976  }
   0x2   :  { %v730_v3 = vld [vmem:[%s1142_s1 + $0x20] sm:$0xff]  ;;  %v846_v8 = vpack.c.bf16 %v83_v2, %v82_v1  ;;  %v731_v9 = vld [vmem:[%s1142_s1 + $0x28] sm:$0xff]  ;;  %v85_v11 = vld [vmem:[%s1142_s1 + $0x18] sm:$0xff]  ;;  %v21_v12 = vshrl.u32 %v20_v0, 7 }
   0x3   :  { %v854_v13 = vpack.c.bf16 %v731_v9, %v730_v3  ;;  %v850_v14 = vpack.c.bf16 %v85_v11, %v84_v10  ;;  %v732_v15 = vld [vmem:[%s1142_s1 + $0x30] sm:$0xff]  ;;  %v733_v16 = vld [vmem:[%s1142_s1 + $0x38] sm:$0xff]  ;;  %v14_v17 = vld [vmem:[%s1143_s0] sm:$0xff]  ;;  %v19_v18 = vunpack.c.0.s8 %v18_v5  ;;  %v50_v19 = vunpack.c.0.s8 %v49_v7 }
   0x4   :  { %847 = vmatprep.subr.bf16.mxu0 %v846_v8  ;;  %v858_v20 = vpack.c.bf16 %v733_v16, %v732_v15  ;;  %v15_v21 = vld [vmem:[%s1143_s0 + $0x8] sm:$0xff]  ;;  %v746_v22 = vld [vmem:[%s1142_s1 + $0x40] sm:$0xff]  ;;  %v16_v25 = vcombine.high %v14_v17, %v883_v24  ;;  %v748_v53 = vld [vmem:[%s1142_s1 + $0x50] sm:$0xff] }
   0x5   :  { %v747_v23 = vld [vmem:[%s1142_s1 + $0x48] sm:$0xff]  ;;  %855 = vmatprep.subr.bf16.mxu1 %v854_v13  ;;  %849 = vmatpush3.bf16.msra.mxu0 %v846_v8  ;;  %v940_v26 = vsub.s32 %v19_v18, %v21_v12  ;;  %v762_v27 = vld [vmem:[%s1142_s1 + $0x60] sm:$0xff]  ;;  %v53_v29 = vsub.s32 %v50_v19, %v21_v12  ;;  %v31_v31 = vcombine.high %v15_v21, %v883_v24  ;;  %v749_v56 = vld [vmem:[%s1142_s1 + $0x58] sm:$0xff] }
   0x6   :  { %v763_v28 = vld [vmem:[%s1142_s1 + $0x68] sm:$0xff]  ;;  %857 = vmatpush3.bf16.msra.mxu1 %v854_v13  ;;  %851 = vmatprep.subr.bf16.mxu0 %v850_v14  ;;  %v862_v30 = vpack.c.bf16 %v747_v23, %v746_v22  ;;  %v764_v57 = vld [vmem:[%s1142_s1 + $0x70] sm:$0xff]  ;;  %v765_v58 = vld [vmem:[%s1142_s1 + $0x78] sm:$0xff]  ;;  %v866_v63 = vpack.c.bf16 %v749_v56, %v748_v53 }
   0x7   :  { %859 = vmatprep.subr.bf16.mxu1 %v858_v20  ;;  %v23_v32 = vrot.slane %v14_v17, %v940_v26  ;;  %v38_v33 = vrot.slane %v15_v21, %v940_v26  ;;  %v870_v34 = vpack.c.bf16 %v763_v28, %v762_v27  ;;  %v30_v35 = vrot.slane %v16_v25, %v940_v26  ;;  %v729_v2 = vld [vmem:[%s1144_s2] ss:$0 sm:$0xff]  ;;  %v984_v8 = vld [vmem:[%s1144_s2 + $0x1] ss:$0 sm:$0xff] }
   0x8   :  { %v45_v36 = vrot.slane %v31_v31, %v940_v26  ;;  %v874_v0 = vpack.c.bf16 %v765_v58, %v764_v57 }
   0x9   :  { %853 = vmatpush3.bf16.msra.mxu0 %v850_v14  ;;  %v46_v37 = vcombine.low %v23_v32, %v38_v33  ;;  %v47_v38 = vcombine.high %v23_v32, %v38_v33 }
   0xa   :  { %861 = vmatpush3.bf16.msra.mxu1 %v858_v20  ;;  %863 = vmatprep.subr.bf16.mxu0 %v862_v30  ;;  %v62_v39 = vcombine.low %v30_v35, %v45_v36  ;;  %v63_v40 = vcombine.high %v30_v35, %v45_v36 }
   0xb   :  { %v54_v41 = vrot.slane %v46_v37, %v53_v29  ;;  %v61_v42 = vrot.slane %v47_v38, %v53_v29  ;;  %871 = vmatprep.subr.bf16.mxu1 %v870_v34 }
   0xc   :  { %v70_v43 = vrot.slane %v62_v39, %v53_v29  ;;  %v77_v44 = vrot.slane %v63_v40, %v53_v29 }
   0xd   :  { %v78_v45 = vcombine.high %v54_v41, %v883_v24  ;;  %v79_v46 = vcombine.high %v61_v42, %v883_v24 }
   0xe   :  { %v80_v47 = vcombine.high %v70_v43, %v883_v24  ;;  %v81_v48 = vcombine.high %v77_v44, %v883_v24 }
   0xf   :  { %v94_v49 = vcombine.low %v54_v41, %v78_v45  ;;  %v95_v50 = vcombine.low %v61_v42, %v79_v46  ;;  %v753_v41 = vld [vmem:[%s1144_s2 + $0x2] ss:$0 sm:$0xff] }
  0x10   :  { %v111_v51 = vcombine.low %v70_v43, %v80_v47  ;;  %v112_v52 = vcombine.low %v77_v44, %v81_v48  ;;  %v769_v47 = vld [vmem:[%s1144_s2 + $0x3] ss:$0 sm:$0xff] }
  0x11   :  { %v102_v54 = vrot.slane %v94_v49, %v940_v26  ;;  %v109_v55 = vrot.slane %v95_v50, %v940_v26 }
  0x12   :  { %v119_v59 = vrot.slane %v111_v51, %v940_v26  ;;  %v126_v60 = vrot.slane %v112_v52, %v940_v26 }
  0x13   :  { %v110_v61 = vcombine.low %v102_v54, %v109_v55 }
  0x14   :  { %v127_v62 = vcombine.low %v119_v59, %v126_v60 }
  0x15   :  { %810 = vmatprep.mubr.msk.f32.mxu0 %vm128_vm0, %v110_v61  ;;  %821 = vmatprep.mubr.msk.f32.mxu1 %vm128_vm0, %v110_v61 }
  0x16   :  { %811 = vmatmul.mubr.msk.f32.vlgmr.msra.gmra.mrb[0].mxu0 %vm128_vm0, %v127_v62  ;;  %822 = vmatmul.mubr.msk.f32.vlgmr.msra.gmra.mrb[0].mxu1 %vm128_vm0, %v127_v62 }
  0x17   :  { %865 = vmatpush3.bf16.msra.mxu0 %v862_v30  ;;  %873 = vmatpush3.bf16.msra.mxu1 %v870_v34 }
  0x18   :  { %867 = vmatprep.subr.bf16.mxu0 %v866_v63  ;;  %875 = vmatprep.subr.bf16.mxu1 %v874_v0 }
  0x19   :  { %832 = vmatprep.mubr.msk.f32.mxu0 %vm128_vm0, %v110_v61  ;;  %843 = vmatprep.mubr.msk.f32.mxu1 %vm128_vm0, %v110_v61 }
  0x1b   :  { %869 = vmatpush3.bf16.msra.mxu0 %v866_v63  ;;  %877 = vmatpush3.bf16.msra.mxu1 %v874_v0 }
  0x1e   :  { %833 = vmatmul.mubr.msk.f32.vlgmr.msra.gmra.mrb[2].mxu0 %vm128_vm0, %v127_v62  ;;  %844 = vmatmul.mubr.msk.f32.vlgmr.msra.gmra.mrb[2].mxu1 %vm128_vm0, %v127_v62 }
  0xe9   :  { %v812_v1 = vpop.f32.mrb[0].mxu0  ;;  %v823_v3 = vpop.f32.mrb[0].mxu1 }
  0xea   :  { %v227_v4 = vcombine.high %v812_v1, %v812_v1  ;;  %v234_v5 = vrot.slane %v812_v1, %v940_v26  ;;  %v375_v6 = vcombine.high %v823_v3, %v823_v3  ;;  %v382_v7 = vrot.slane %v823_v3, %v940_v26  ;;  %v199_v9 = vpop.f32.mrb[1].mxu0  ;;  %v347_v10 = vpop.f32.mrb[1].mxu1 }
  0xeb   :  { %v210_v11 = vcombine.high %v199_v9, %v199_v9  ;;  %v217_v12 = vrot.slane %v199_v9, %v940_v26  ;;  %v358_v13 = vcombine.high %v347_v10, %v347_v10  ;;  %v365_v14 = vrot.slane %v347_v10, %v940_v26 }
  0xec   :  { %v241_v15 = vrot.slane %v227_v4, %v940_v26  ;;  %v242_v16 = vcombine.high %v234_v5, %v234_v5  ;;  %v263_v17 = vadd.f32 %v729_v2, %v234_v5  ;;  %v389_v18 = vrot.slane %v375_v6, %v940_v26 }
  0xed   :  { %v390_v19 = vcombine.high %v382_v7, %v382_v7  ;;  %v412_v20 = vadd.f32 %v984_v8, %v382_v7  ;;  %v224_v21 = vrot.slane %v210_v11, %v940_v26  ;;  %v225_v22 = vcombine.high %v217_v12, %v217_v12 }
  0xee   :  { %v243_v23 = vcombine.high %v241_v15, %v241_v15  ;;  %v264_v24 = vadd.f32 %v729_v2, %v242_v16  ;;  %v265_v25 = vadd.f32 %v729_v2, %v241_v15  ;;  %272 = vst.msk [vmem:[%s1145_s3 + $0x8] sm:$0x3] %vm267_vm1, %v263_v17  ;;  %v391_v27 = vcombine.high %v389_v18, %v389_v18 }
  0xef   :  { %v413_v28 = vadd.f32 %v984_v8, %v390_v19  ;;  %v414_v29 = vadd.f32 %v984_v8, %v389_v18  ;;  %742 = vst.msk [vmem:[%s1145_s3 + $0x18] sm:$0x3] %vm267_vm1, %v412_v20  ;;  %v226_v30 = vcombine.high %v224_v21, %v224_v21  ;;  %v259_v31 = vadd.f32 %v729_v2, %v217_v12 }
  0xf0   :  { %v266_v32 = vadd.f32 %v729_v2, %v243_v23  ;;  %273 = vst.msk [vmem:[%s1145_s3 + $0xa] sm:$0x3] %vm267_vm1, %v264_v24  ;;  %274 = vst.msk [vmem:[%s1145_s3 + $0xc] sm:$0x3] %vm267_vm1, %v265_v25  ;;  %v415_v33 = vadd.f32 %v984_v8, %v391_v27  ;;  %v260_v34 = vadd.f32 %v729_v2, %v225_v22 }
  0xf1   :  { %v261_v35 = vadd.f32 %v729_v2, %v224_v21  ;;  %743 = vst.msk [vmem:[%s1145_s3 + $0x1a] sm:$0x3] %vm267_vm1, %v413_v28  ;;  %744 = vst.msk [vmem:[%s1145_s3 + $0x1c] sm:$0x3] %vm267_vm1, %v414_v29  ;;  %v262_v36 = vadd.f32 %v729_v2, %v226_v30  ;;  %v372_v37 = vrot.slane %v358_v13, %v940_v26  ;;  %v834_v40 = vpop.f32.mrb[2].mxu0  ;;  %v845_v42 = vpop.f32.mrb[2].mxu1 }
  0xf2   :  { %268 = vst.msk [vmem:[%s1145_s3] sm:$0x3] %vm267_vm1, %v259_v31  ;;  %v373_v38 = vcombine.high %v365_v14, %v365_v14  ;;  %v408_v39 = vadd.f32 %v984_v8, %v365_v14  ;;  %275 = vst.msk [vmem:[%s1145_s3 + $0xe] sm:$0x3] %vm267_vm1, %v266_v32  ;;  %v524_v43 = vcombine.high %v834_v40, %v834_v40  ;;  %v496_v48 = vpop.f32.mrb[3].mxu0  ;;  %v645_v49 = vpop.f32.mrb[3].mxu1 }
  0xf3   :  { %745 = vst.msk [vmem:[%s1145_s3 + $0x1e] sm:$0x3] %vm267_vm1, %v415_v33  ;;  %269 = vst.msk [vmem:[%s1145_s3 + $0x2] sm:$0x3] %vm267_vm1, %v260_v34  ;;  %v531_v44 = vrot.slane %v834_v40, %v940_v26  ;;  %v673_v45 = vcombine.high %v845_v42, %v845_v42  ;;  %v680_v46 = vrot.slane %v845_v42, %v940_v26 }
  0xf4   :  { %270 = vst.msk [vmem:[%s1145_s3 + $0x4] sm:$0x3] %vm267_vm1, %v261_v35  ;;  %271 = vst.msk [vmem:[%s1145_s3 + $0x6] sm:$0x3] %vm267_vm1, %v262_v36  ;;  %v374_v50 = vcombine.high %v372_v37, %v372_v37  ;;  %v409_v51 = vadd.f32 %v984_v8, %v373_v38  ;;  %v410_v52 = vadd.f32 %v984_v8, %v372_v37 }
  0xf5   :  { %738 = vst.msk [vmem:[%s1145_s3 + $0x10] sm:$0x3] %vm267_vm1, %v408_v39  ;;  %v507_v53 = vcombine.high %v496_v48, %v496_v48  ;;  %v538_v54 = vrot.slane %v524_v43, %v940_v26  ;;  %v539_v55 = vcombine.high %v531_v44, %v531_v44  ;;  %v561_v56 = vadd.f32 %v753_v41, %v531_v44 }
  0xf6   :  { %v687_v57 = vrot.slane %v673_v45, %v940_v26  ;;  %v411_v58 = vadd.f32 %v984_v8, %v374_v50  ;;  %739 = vst.msk [vmem:[%s1145_s3 + $0x12] sm:$0x3] %vm267_vm1, %v409_v51  ;;  %740 = vst.msk [vmem:[%s1145_s3 + $0x14] sm:$0x3] %vm267_vm1, %v410_v52  ;;  %v688_v59 = vcombine.high %v680_v46, %v680_v46 }
  0xf7   :  { %v710_v60 = vadd.f32 %v769_v47, %v680_v46  ;;  %v514_v61 = vrot.slane %v496_v48, %v940_v26  ;;  %v540_v62 = vcombine.high %v538_v54, %v538_v54  ;;  %v562_v63 = vadd.f32 %v753_v41, %v539_v55  ;;  %758 = vst.msk [vmem:[%s1145_s3 + $0x28] sm:$0x3] %vm267_vm1, %v561_v56 }
  0xf8   :  { %v563_v0 = vadd.f32 %v753_v41, %v538_v54  ;;  %v689_v1 = vcombine.high %v687_v57, %v687_v57  ;;  %741 = vst.msk [vmem:[%s1145_s3 + $0x16] sm:$0x3] %vm267_vm1, %v411_v58  ;;  %v711_v2 = vadd.f32 %v769_v47, %v688_v59  ;;  %v712_v3 = vadd.f32 %v769_v47, %v687_v57 }
  0xf9   :  { %774 = vst.msk [vmem:[%s1145_s3 + $0x38] sm:$0x3] %vm267_vm1, %v710_v60  ;;  %v521_v4 = vrot.slane %v507_v53, %v940_v26  ;;  %v522_v5 = vcombine.high %v514_v61, %v514_v61  ;;  %v564_v6 = vadd.f32 %v753_v41, %v540_v62  ;;  %759 = vst.msk [vmem:[%s1145_s3 + $0x2a] sm:$0x3] %vm267_vm1, %v562_v63 }
  0xfa   :  { %760 = vst.msk [vmem:[%s1145_s3 + $0x2c] sm:$0x3] %vm267_vm1, %v563_v0  ;;  %v713_v7 = vadd.f32 %v769_v47, %v689_v1  ;;  %v557_v8 = vadd.f32 %v753_v41, %v514_v61  ;;  %v656_v9 = vcombine.high %v645_v49, %v645_v49  ;;  %775 = vst.msk [vmem:[%s1145_s3 + $0x3a] sm:$0x3] %vm267_vm1, %v711_v2 }
  0xfb   :  { %776 = vst.msk [vmem:[%s1145_s3 + $0x3c] sm:$0x3] %vm267_vm1, %v712_v3  ;;  %v523_v10 = vcombine.high %v521_v4, %v521_v4  ;;  %v558_v11 = vadd.f32 %v753_v41, %v522_v5  ;;  %v559_v12 = vadd.f32 %v753_v41, %v521_v4  ;;  %v663_v13 = vrot.slane %v645_v49, %v940_v26 }
  0xfc   :  { %761 = vst.msk [vmem:[%s1145_s3 + $0x2e] sm:$0x3] %vm267_vm1, %v564_v6  ;;  %777 = vst.msk [vmem:[%s1145_s3 + $0x3e] sm:$0x3] %vm267_vm1, %v713_v7  ;;  %v670_v14 = vrot.slane %v656_v9, %v940_v26 }
  0xfd   :  { %754 = vst.msk [vmem:[%s1145_s3 + $0x20] sm:$0x3] %vm267_vm1, %v557_v8  ;;  %v560_v15 = vadd.f32 %v753_v41, %v523_v10  ;;  %755 = vst.msk [vmem:[%s1145_s3 + $0x22] sm:$0x3] %vm267_vm1, %v558_v11  ;;  %v671_v16 = vcombine.high %v663_v13, %v663_v13  ;;  %v706_v17 = vadd.f32 %v769_v47, %v663_v13 }
  0xfe   :  { %756 = vst.msk [vmem:[%s1145_s3 + $0x24] sm:$0x3] %vm267_vm1, %v559_v12  ;;  %v672_v18 = vcombine.high %v670_v14, %v670_v14  ;;  %v708_v19 = vadd.f32 %v769_v47, %v670_v14 }
  0xff   :  { %757 = vst.msk [vmem:[%s1145_s3 + $0x26] sm:$0x3] %vm267_vm1, %v560_v15  ;;  %v707_v26 = vadd.f32 %v769_v47, %v671_v16  ;;  %770 = vst.msk [vmem:[%s1145_s3 + $0x30] sm:$0x3] %vm267_vm1, %v706_v17 }
 0x100   :  { %v709_v20 = vadd.f32 %v769_v47, %v672_v18  ;;  %772 = vst.msk [vmem:[%s1145_s3 + $0x34] sm:$0x3] %vm267_vm1, %v708_v19 }
 0x101   :  { %771 = vst.msk [vmem:[%s1145_s3 + $0x32] sm:$0x3] %vm267_vm1, %v707_v26 }
 0x102   :  { %773 = vst.msk [vmem:[%s1145_s3 + $0x36] sm:$0x3] %vm267_vm1, %v709_v20 }

// kernel: lstm_forward.4
= control target key start
LH: loop header
LB: loop body
LE: loop exit
PB: predicated region body
PF: predicated region fallthrough
CT: control target
= control target key end

     0   :  { %10 = vsyncpa [#allocation5], 0  ;;  %v3642_v3 = vmov 0.0|0.0   ;;  %vm20_vm0 = vcmask 254976   ;;  %vm3643_vm1 = vmmov 0   ;;  %v3644_v11 = vmov 0.0   ;;  %s4144_s0 = inlined_call_operand.vmem [shape: f32[4,8,2,32], index: 0, kind: input, shape index: {}]   ;;  %s4145_s1 = inlined_call_operand.vmem [shape: f32[4,32,32], index: 1, kind: input, shape index: {}]   ;;  %s4146_s2 = inlined_call_operand.vmem [shape: f32[8,2,32], index: 2, kind: output, shape index: {0}]   ;;  %s4147_s3 = inlined_call_operand.hbm [shape: f32[2,32], index: 3, kind: output, shape index: {1}]   ;;  %s4148_s4 = inlined_call_operand.hbm [shape: f32[2,32], index: 4, kind: output, shape index: {2}]  }
   0x1   :  { %v25_v0 = vld [vmem:[%s4145_s1] sm:$0xff]  ;;  %v26_v1 = vld [vmem:[%s4145_s1 + $0x8] sm:$0xff]  ;;  %3269 = vmatprep.subr.bf16.mxu0 %v3642_v3  ;;  %3275 = vmatprep.subr.bf16.mxu1 %v3642_v3  ;;  %v27_v6 = vld [vmem:[%s4145_s1 + $0x10] sm:$0xff]  ;;  %21 = vst.msk [vmem:[#allocation2] sm:$0x3] %vm20_vm0, %v3644_v11 }
   0x2   :  { %v2651_v2 = vld [vmem:[%s4145_s1 + $0x20] sm:$0xff]  ;;  %v3683_v4 = vpack.c.bf16 %v26_v1, %v25_v0  ;;  %v2652_v5 = vld [vmem:[%s4145_s1 + $0x28] sm:$0xff]  ;;  %v28_v7 = vld [vmem:[%s4145_s1 + $0x18] sm:$0xff]  ;;  %2925 = vmatprep.mubr.msk.f32.mxu0 %vm3643_vm1, %v3644_v11  ;;  %2936 = vmatprep.mubr.msk.f32.mxu1 %vm3643_vm1, %v3644_v11  ;;  %22 = vst.msk [vmem:[#allocation3] sm:$0x3] %vm20_vm0, %v3644_v11 }
   0x3   :  { %v3694_v8 = vpack.c.bf16 %v2652_v5, %v2651_v2  ;;  %v2653_v9 = vld [vmem:[%s4145_s1 + $0x30] sm:$0xff]  ;;  %v2654_v10 = vld [vmem:[%s4145_s1 + $0x38] sm:$0xff]  ;;  %v3711_v12 = vpack.c.bf16 %v28_v7, %v27_v6  ;;  %v2655_v14 = vld [vmem:[%s4145_s1 + $0x40] sm:$0xff] }
   0x4   :  { %3271 = vmatpush3.bf16.msra.mxu0 %v3683_v4  ;;  %v3715_v13 = vpack.c.bf16 %v2654_v10, %v2653_v9  ;;  %v2656_v15 = vld [vmem:[%s4145_s1 + $0x48] sm:$0xff]  ;;  %v2659_v16 = vld [vmem:[%s4145_s1 + $0x60] sm:$0xff] }
   0x5   :  { %3277 = vmatpush3.bf16.msra.mxu1 %v3694_v8  ;;  %3272 = vmatprep.subr.bf16.mxu0 %v3642_v3  ;;  %v2660_v17 = vld [vmem:[%s4145_s1 + $0x68] sm:$0xff] }
   0x6   :  { %3278 = vmatprep.subr.bf16.mxu1 %v3642_v3 }
   0x7   :  { %11 = vsyncpa [#allocation7], 0  ;;  %vm45_vm2 = vcmask 261120   ;;  %v3731_v18 = vpack.c.bf16 %v2656_v15, %v2655_v14  ;;  %v3735_v19 = vpack.c.bf16 %v2660_v17, %v2659_v16  ;;  %v2657_v20 = vld [vmem:[%s4145_s1 + $0x50] sm:$0xff]  ;;  %v2658_v21 = vld [vmem:[%s4145_s1 + $0x58] sm:$0xff]  ;;  %s3645_s18 = smov [#allocation6]  }
   0x8   :  { %3274 = vmatpush3.bf16.msra.mxu0 %v3711_v12  ;;  %v23_v22 = vld [vmem:[#allocation2] sm:$0x3]  ;;  %v2661_v23 = vld [vmem:[%s4145_s1 + $0x70] sm:$0xff]  ;;  %v2662_v24 = vld [vmem:[%s4145_s1 + $0x78] sm:$0xff]  ;;  %v3753_v25 = vpack.c.bf16 %v2658_v21, %v2657_v20  ;;  %s2637_s19 = sshll.u32 %s3645_s18, 4  ;;  %s2638_s19 = int_to_ptr.vmem [resolvable:$true] %s2637_s19 }
   0x9   :  { %3280 = vmatpush3.bf16.msra.mxu1 %v3715_v13  ;;  %3281 = vmatprep.subr.bf16.mxu0 %v3642_v3  ;;  %v3757_v26 = vpack.c.bf16 %v2662_v24, %v2661_v23  ;;  %v44_v27 = vld [vmem:[%s4144_s0] sm:$0x3]  ;;  %v2665_v28 = vld [vmem:[%s4144_s0 + $0x10] sm:$0x3]  ;;  %v24_v52 = vld [vmem:[#allocation3] sm:$0x3]  ;;  %p3599_p1 = scmp.lt.s32.totalorder %s2638_s19, %s2638_s19 }
   0xa   :  { %3287 = vmatprep.subr.bf16.mxu1 %v3642_v3  ;;  %v2670_v37 = vld [vmem:[%s4144_s0 + $0x30] sm:$0x3]  ;;  %v2668_v39 = vld [vmem:[%s4144_s0 + $0x20] sm:$0x3]  ;;  %v2673_v62 = vld [vmem:[%s4144_s0 + $0x2] sm:$0x3] }
   0xb   :  { %2926 = vmatmul.mubr.msk.f32.vlgmr.msra.gmra.mrb[0].mxu0 %vm45_vm2, %v23_v22  ;;  %v2676_v63 = vld [vmem:[%s4144_s0 + $0x12] sm:$0x3] }
   0xc   :  { %2937 = vmatmul.mubr.msk.f32.vlgmr.msra.gmra.mrb[0].mxu1 %vm45_vm2, %v23_v22  ;;  %3283 = vmatpush3.bf16.msra.mxu0 %v3731_v18  ;;  %v2681_v14 = vld [vmem:[%s4144_s0 + $0x32] sm:$0x3] }
   0xd   :  { %3289 = vmatpush3.bf16.msra.mxu1 %v3735_v19  ;;  %3284 = vmatprep.subr.bf16.mxu0 %v3642_v3 }
   0xe   :  { %3290 = vmatprep.subr.bf16.mxu1 %v3642_v3  ;;  %2947 = vmatprep.mubr.msk.f32.mxu0 %vm3643_vm1, %v3644_v11 }
   0xf   :  { %2958 = vmatprep.mubr.msk.f32.mxu1 %vm3643_vm1, %v3644_v11 }
  0x10   :  { %3286 = vmatpush3.bf16.msra.mxu0 %v3753_v25 }
  0x11   :  { %3292 = vmatpush3.bf16.msra.mxu1 %v3757_v26  ;;  %3293 = vmatprep.subr.bf16.mxu0 %v3642_v3 }
  0x12   :  { %3299 = vmatprep.subr.bf16.mxu1 %v3642_v3 }
  0x13   :  { %2948 = vmatmul.mubr.msk.f32.vlgmr.msra.gmra.mrb[2].mxu0 %vm45_vm2, %v23_v22 }
  0x14   :  { %2959 = vmatmul.mubr.msk.f32.vlgmr.msra.gmra.mrb[2].mxu1 %vm45_vm2, %v23_v22  ;;  %3295 = vmatpush3.bf16.msra.mxu0 %v3683_v4  ;;  %v2679_v22 = vld [vmem:[%s4144_s0 + $0x22] sm:$0x3] }
  0x15   :  { %3301 = vmatpush3.bf16.msra.mxu1 %v3694_v8  ;;  %3296 = vmatprep.subr.bf16.mxu0 %v3642_v3 }
  0x16   :  { %3302 = vmatprep.subr.bf16.mxu1 %v3642_v3  ;;  %2969 = vmatprep.mubr.msk.f32.mxu0 %vm3643_vm1, %v3644_v11 }
  0x17   :  { %2980 = vmatprep.mubr.msk.f32.mxu1 %vm3643_vm1, %v3644_v11 }
  0x18   :  { %3298 = vmatpush3.bf16.msra.mxu0 %v3711_v12 }
  0x19   :  { %3304 = vmatpush3.bf16.msra.mxu1 %v3715_v13  ;;  %3305 = vmatprep.subr.bf16.mxu0 %v3642_v3 }
  0x1a   :  { %3311 = vmatprep.subr.bf16.mxu1 %v3642_v3 }
  0xde   :  { %v115_v29 = vpop.f32.mrb[0].mxu0 }
  0xdf   :  { %v119_v30 = vadd.f32 %v115_v29, %v44_v27  ;;  %v194_v31 = vpop.f32.mrb[0].mxu1  ;;  %v2927_v32 = vpop.f32.mrb[1].mxu0 }
  0xe0   :  { %v198_v33 = vadd.f32 %v2665_v28, %v194_v31  ;;  %v2938_v34 = vpop.f32.mrb[1].mxu1 }
  0xe1   :  { %v2664_v35 = vmul.f32 -1.442695, %v119_v30 }
  0xe2   :  { %v2667_v36 = vmul.f32 -1.442695, %v198_v33 }
  0xe3   :  { %3466 = vpow2.f32 %v2664_v35 }
  0xe4   :  { %3468 = vpow2.f32 %v2667_v36 }
  0xe6   :  { %v273_v38 = vpop.f32.mrb[2].mxu0 }
  0xe7   :  { %v347_v40 = vpop.f32.mrb[2].mxu1  ;;  %v2949_v41 = vpop.f32.mrb[3].mxu0  ;;  %v277_v44 = vadd.f32 %v2668_v39, %v273_v38 }
  0xe8   :  { %v351_v42 = vadd.f32 %v2670_v37, %v347_v40  ;;  %v2960_v43 = vpop.f32.mrb[3].mxu1 }
  0xe9   :  { %v2688_v43 = vld [vmem:[%s4144_s0 + $0x14] sm:$0x3] }
  0xea   :  { %v2672_v45 = vmul.f32 -1.442695, %v351_v42  ;;  %v2685_v42 = vld [vmem:[%s4144_s0 + $0x4] sm:$0x3] }
  0xec   :  { %3470 = vpow2.f32 %v2672_v45 }
  0xed   :  { %v3467_v46 = vpop.eup %3466  ;;  %3472 = vtanh.f32 %v277_v44 }
  0xee   :  { %v3469_v47 = vpop.eup %3468  ;;  %v123_v48 = vadd.f32 1.0, %v3467_v46 }
  0xef   :  { %v202_v49 = vadd.f32 1.0, %v3469_v47 }
  0xf0   :  { %3474 = vrcp.f32 %v123_v48 }
  0xf1   :  { %3476 = vrcp.f32 %v202_v49 }
  0xf6   :  { %v3471_v50 = vpop.eup %3470 }
  0xf7   :  { %v3473_v51 = vpop.eup %3472  ;;  %v355_v54 = vadd.f32 1.0, %v3471_v50 }
  0xf9   :  { %3478 = vrcp.f32 %v355_v54 }
  0xfa   :  { %v3475_v53 = vpop.eup %3474 }
  0xfb   :  { %v3477_v55 = vpop.eup %3476  ;;  %v359_v56 = vmul.f32 %v3475_v53, %v3473_v51 }
  0xfc   :  { %v358_v57 = vmul.f32 %v3477_v55, %v24_v52  ;;  %v2693_v52 = vld [vmem:[%s4144_s0 + $0x34] sm:$0x3] }
  0xfe   :  { %v3794_v58 = vadd.f32 %v359_v56, %v358_v57 }
 0x100   :  { %3480 = vtanh.f32 %v3794_v58 }
 0x103   :  { %v3479_v59 = vpop.eup %3478 }
 0x10a   :  { %v3481_v60 = vpop.eup %3480 }
 0x10b   :  { %v362_v61 = vmul.f32 %v3481_v60, %v3479_v59 }
 0x10d   :  { %364 = vst.msk [vmem:[%s4146_s2] sm:$0x3] %vm20_vm0, %v362_v61  ;;  %2970 = vmatmul.mubr.msk.f32.vlgmr.msra.gmra.mrb[4].mxu0 %vm45_vm2, %v362_v61  ;;  %2981 = vmatmul.mubr.msk.f32.vlgmr.msra.gmra.mrb[4].mxu1 %vm45_vm2, %v362_v61 }
 0x10e   :  { %3307 = vmatpush3.bf16.msra.mxu0 %v3731_v18  ;;  %3313 = vmatpush3.bf16.msra.mxu1 %v3735_v19 }
 0x10f   :  { %3308 = vmatprep.subr.bf16.mxu0 %v3642_v3  ;;  %3314 = vmatprep.subr.bf16.mxu1 %v3642_v3 }
 0x110   :  { %2991 = vmatprep.mubr.msk.f32.mxu0 %vm3643_vm1, %v3644_v11  ;;  %3002 = vmatprep.mubr.msk.f32.mxu1 %vm3643_vm1, %v3644_v11 }
 0x112   :  { %3310 = vmatpush3.bf16.msra.mxu0 %v3753_v25  ;;  %3316 = vmatpush3.bf16.msra.mxu1 %v3757_v26 }
 0x113   :  { %3317 = vmatprep.subr.bf16.mxu0 %v3642_v3  ;;  %3323 = vmatprep.subr.bf16.mxu1 %v3642_v3 }
 0x115   :  { %2992 = vmatmul.mubr.msk.f32.vlgmr.msra.gmra.mrb[6].mxu0 %vm45_vm2, %v362_v61  ;;  %3003 = vmatmul.mubr.msk.f32.vlgmr.msra.gmra.mrb[6].mxu1 %vm45_vm2, %v362_v61 }
 0x116   :  { %3319 = vmatpush3.bf16.msra.mxu0 %v3683_v4  ;;  %3325 = vmatpush3.bf16.msra.mxu1 %v3694_v8 }
 0x117   :  { %3320 = vmatprep.subr.bf16.mxu0 %v3642_v3  ;;  %3326 = vmatprep.subr.bf16.mxu1 %v3642_v3 }
 0x118   :  { %3013 = vmatprep.mubr.msk.f32.mxu0 %vm3643_vm1, %v3644_v11  ;;  %3024 = vmatprep.mubr.msk.f32.mxu1 %vm3643_vm1, %v3644_v11 }
 0x11a   :  { %3322 = vmatpush3.bf16.msra.mxu0 %v3711_v12  ;;  %3328 = vmatpush3.bf16.msra.mxu1 %v3715_v13 }
 0x11b   :  { %3329 = vmatprep.subr.bf16.mxu0 %v3642_v3  ;;  %3335 = vmatprep.subr.bf16.mxu1 %v3642_v3 }
 0x1e0   :  { %v436_v0 = vpop.f32.mrb[4].mxu0  ;;  %v515_v1 = vpop.f32.mrb[4].mxu1 }
 0x1e1   :  { %v440_v2 = vadd.f32 %v2673_v62, %v436_v0  ;;  %v519_v5 = vadd.f32 %v2676_v63, %v515_v1  ;;  %v2971_v6 = vpop.f32.mrb[5].mxu0  ;;  %v2982_v7 = vpop.f32.mrb[5].mxu1 }
 0x1e3   :  { %v2675_v9 = vmul.f32 -1.442695, %v440_v2  ;;  %v2678_v10 = vmul.f32 -1.442695, %v519_v5 }
 0x1e5   :  { %3482 = vpow2.f32 %v2675_v9 }
 0x1e6   :  { %3484 = vpow2.f32 %v2678_v10 }
 0x1e8   :  { %v594_v15 = vpop.f32.mrb[6].mxu0  ;;  %v668_v16 = vpop.f32.mrb[6].mxu1 }
 0x1e9   :  { %v672_v17 = vadd.f32 %v2681_v14, %v668_v16  ;;  %v2993_v20 = vpop.f32.mrb[7].mxu0  ;;  %v3004_v21 = vpop.f32.mrb[7].mxu1  ;;  %v598_v24 = vadd.f32 %v2679_v22, %v594_v15 }
 0x1ea   :  { %v2697_v20 = vld [vmem:[%s4144_s0 + $0x6] sm:$0x3]  ;;  %v2700_v21 = vld [vmem:[%s4144_s0 + $0x16] sm:$0x3] }
 0x1eb   :  { %v2683_v23 = vmul.f32 -1.442695, %v672_v17 }
 0x1ed   :  { %3486 = vpow2.f32 %v2683_v23 }
 0x1ee   :  { %3488 = vtanh.f32 %v598_v24 }
 0x1ef   :  { %v3483_v27 = vpop.eup %3482 }
 0x1f0   :  { %v3485_v28 = vpop.eup %3484  ;;  %v444_v29 = vadd.f32 1.0, %v3483_v27 }
 0x1f1   :  { %v523_v30 = vadd.f32 1.0, %v3485_v28 }
 0x1f2   :  { %3490 = vrcp.f32 %v444_v29 }
 0x1f3   :  { %3492 = vrcp.f32 %v523_v30 }
 0x1f7   :  { %v3487_v31 = vpop.eup %3486 }
 0x1f8   :  { %v3489_v32 = vpop.eup %3488  ;;  %v676_v36 = vadd.f32 1.0, %v3487_v31 }
 0x1fa   :  { %3494 = vrcp.f32 %v676_v36 }
 0x1fc   :  { %v3491_v33 = vpop.eup %3490 }
 0x1fd   :  { %v3493_v34 = vpop.eup %3492  ;;  %v680_v35 = vmul.f32 %v3491_v33, %v3489_v32  ;;  %v2705_v32 = vld [vmem:[%s4144_s0 + $0x36] sm:$0x3] }
 0x1fe   :  { %v679_v37 = vmul.f32 %v3493_v34, %v3794_v58  ;;  %v2691_v58 = vld [vmem:[%s4144_s0 + $0x24] sm:$0x3] }
 0x200   :  { %v3842_v38 = vadd.f32 %v680_v35, %v679_v37 }
 0x202   :  { %3496 = vtanh.f32 %v3842_v38 }
 0x204   :  { %v3495_v39 = vpop.eup %3494 }
 0x20c   :  { %v3497_v40 = vpop.eup %3496 }
 0x20d   :  { %v683_v41 = vmul.f32 %v3497_v40, %v3495_v39 }
 0x20f   :  { %2684 = vst.msk [vmem:[%s4146_s2 + $0x2] sm:$0x3] %vm20_vm0, %v683_v41  ;;  %3014 = vmatmul.mubr.msk.f32.vlgmr.msra.gmra.mrb[8].mxu0 %vm45_vm2, %v683_v41  ;;  %3025 = vmatmul.mubr.msk.f32.vlgmr.msra.gmra.mrb[8].mxu1 %vm45_vm2, %v683_v41 }
 0x210   :  { %3331 = vmatpush3.bf16.msra.mxu0 %v3731_v18  ;;  %3337 = vmatpush3.bf16.msra.mxu1 %v3735_v19 }
 0x211   :  { %3332 = vmatprep.subr.bf16.mxu0 %v3642_v3  ;;  %3338 = vmatprep.subr.bf16.mxu1 %v3642_v3 }
 0x212   :  { %3035 = vmatprep.mubr.msk.f32.mxu0 %vm3643_vm1, %v3644_v11  ;;  %3046 = vmatprep.mubr.msk.f32.mxu1 %vm3643_vm1, %v3644_v11 }
 0x214   :  { %3334 = vmatpush3.bf16.msra.mxu0 %v3753_v25  ;;  %3340 = vmatpush3.bf16.msra.mxu1 %v3757_v26 }
 0x215   :  { %3341 = vmatprep.subr.bf16.mxu0 %v3642_v3  ;;  %3347 = vmatprep.subr.bf16.mxu1 %v3642_v3 }
 0x217   :  { %3036 = vmatmul.mubr.msk.f32.vlgmr.msra.gmra.mrb[10].mxu0 %vm45_vm2, %v683_v41  ;;  %3047 = vmatmul.mubr.msk.f32.vlgmr.msra.gmra.mrb[10].mxu1 %vm45_vm2, %v683_v41 }
 0x218   :  { %3343 = vmatpush3.bf16.msra.mxu0 %v3683_v4  ;;  %3349 = vmatpush3.bf16.msra.mxu1 %v3694_v8 }
 0x219   :  { %3344 = vmatprep.subr.bf16.mxu0 %v3642_v3  ;;  %3350 = vmatprep.subr.bf16.mxu1 %v3642_v3 }
 0x21a   :  { %3057 = vmatprep.mubr.msk.f32.mxu0 %vm3643_vm1, %v3644_v11  ;;  %3068 = vmatprep.mubr.msk.f32.mxu1 %vm3643_vm1, %v3644_v11 }
 0x21c   :  { %3346 = vmatpush3.bf16.msra.mxu0 %v3711_v12  ;;  %3352 = vmatpush3.bf16.msra.mxu1 %v3715_v13 }
 0x21d   :  { %3353 = vmatprep.subr.bf16.mxu0 %v3642_v3  ;;  %3359 = vmatprep.subr.bf16.mxu1 %v3642_v3 }
 0x2e2   :  { %v757_v44 = vpop.f32.mrb[8].mxu0  ;;  %v836_v45 = vpop.f32.mrb[8].mxu1 }
 0x2e3   :  { %v761_v46 = vadd.f32 %v2685_v42, %v757_v44  ;;  %v840_v47 = vadd.f32 %v2688_v43, %v836_v45  ;;  %v3015_v48 = vpop.f32.mrb[9].mxu0  ;;  %v3026_v49 = vpop.f32.mrb[9].mxu1 }
 0x2e5   :  { %v2687_v50 = vmul.f32 -1.442695, %v761_v46  ;;  %v2690_v51 = vmul.f32 -1.442695, %v840_v47 }
 0x2e7   :  { %3498 = vpow2.f32 %v2687_v50 }
 0x2e8   :  { %3500 = vpow2.f32 %v2690_v51 }
 0x2ea   :  { %v915_v53 = vpop.f32.mrb[10].mxu0  ;;  %v989_v54 = vpop.f32.mrb[10].mxu1 }
 0x2eb   :  { %v993_v55 = vadd.f32 %v2693_v52, %v989_v54  ;;  %v3037_v56 = vpop.f32.mrb[11].mxu0  ;;  %v3048_v57 = vpop.f32.mrb[11].mxu1  ;;  %v919_v60 = vadd.f32 %v2691_v58, %v915_v53 }
 0x2ec   :  { %v2709_v56 = vld [vmem:[%s4144_s0 + $0x8] sm:$0x3]  ;;  %v2712_v57 = vld [vmem:[%s4144_s0 + $0x18] sm:$0x3] }
 0x2ed   :  { %v2695_v59 = vmul.f32 -1.442695, %v993_v55 }
 0x2ef   :  { %3502 = vpow2.f32 %v2695_v59 }
 0x2f0   :  { %3504 = vtanh.f32 %v919_v60 }
 0x2f1   :  { %v3499_v61 = vpop.eup %3498 }
 0x2f2   :  { %v3501_v62 = vpop.eup %3500  ;;  %v765_v63 = vadd.f32 1.0, %v3499_v61 }
 0x2f3   :  { %v844_v0 = vadd.f32 1.0, %v3501_v62 }
 0x2f4   :  { %3506 = vrcp.f32 %v765_v63 }
 0x2f5   :  { %3508 = vrcp.f32 %v844_v0 }
 0x2f9   :  { %v3503_v1 = vpop.eup %3502 }
 0x2fa   :  { %v3505_v2 = vpop.eup %3504  ;;  %v997_v9 = vadd.f32 1.0, %v3503_v1 }
 0x2fc   :  { %3510 = vrcp.f32 %v997_v9 }
 0x2fe   :  { %v3507_v5 = vpop.eup %3506 }
 0x2ff   :  { %v3509_v6 = vpop.eup %3508  ;;  %v1001_v7 = vmul.f32 %v3507_v5, %v3505_v2  ;;  %v2717_v2 = vld [vmem:[%s4144_s0 + $0x38] sm:$0x3] }
 0x300   :  { %v1000_v10 = vmul.f32 %v3509_v6, %v3842_v38  ;;  %v2703_v38 = vld [vmem:[%s4144_s0 + $0x26] sm:$0x3] }
 0x302   :  { %v3890_v14 = vadd.f32 %v1001_v7, %v1000_v10 }
 0x304   :  { %3512 = vtanh.f32 %v3890_v14 }
 0x306   :  { %v3511_v15 = vpop.eup %3510 }
 0x30e   :  { %v3513_v16 = vpop.eup %3512 }
 0x30f   :  { %v1004_v17 = vmul.f32 %v3513_v16, %v3511_v15 }
 0x311   :  { %2696 = vst.msk [vmem:[%s4146_s2 + $0x4] sm:$0x3] %vm20_vm0, %v1004_v17  ;;  %3058 = vmatmul.mubr.msk.f32.vlgmr.msra.gmra.mrb[12].mxu0 %vm45_vm2, %v1004_v17  ;;  %3069 = vmatmul.mubr.msk.f32.vlgmr.msra.gmra.mrb[12].mxu1 %vm45_vm2, %v1004_v17 }
 0x312   :  { %3355 = vmatpush3.bf16.msra.mxu0 %v3731_v18  ;;  %3361 = vmatpush3.bf16.msra.mxu1 %v3735_v19 }
 0x313   :  { %3356 = vmatprep.subr.bf16.mxu0 %v3642_v3  ;;  %3362 = vmatprep.subr.bf16.mxu1 %v3642_v3 }
 0x314   :  { %3079 = vmatprep.mubr.msk.f32.mxu0 %vm3643_vm1, %v3644_v11  ;;  %3090 = vmatprep.mubr.msk.f32.mxu1 %vm3643_vm1, %v3644_v11 }
 0x316   :  { %3358 = vmatpush3.bf16.msra.mxu0 %v3753_v25  ;;  %3364 = vmatpush3.bf16.msra.mxu1 %v3757_v26 }
 0x317   :  { %3365 = vmatprep.subr.bf16.mxu0 %v3642_v3  ;;  %3371 = vmatprep.subr.bf16.mxu1 %v3642_v3 }
 0x319   :  { %3080 = vmatmul.mubr.msk.f32.vlgmr.msra.gmra.mrb[14].mxu0 %vm45_vm2, %v1004_v17  ;;  %3091 = vmatmul.mubr.msk.f32.vlgmr.msra.gmra.mrb[14].mxu1 %vm45_vm2, %v1004_v17 }
 0x31a   :  { %3367 = vmatpush3.bf16.msra.mxu0 %v3683_v4  ;;  %3373 = vmatpush3.bf16.msra.mxu1 %v3694_v8 }
 0x31b   :  { %3368 = vmatprep.subr.bf16.mxu0 %v3642_v3  ;;  %3374 = vmatprep.subr.bf16.mxu1 %v3642_v3 }
 0x31c   :  { %3101 = vmatprep.mubr.msk.f32.mxu0 %vm3643_vm1, %v3644_v11  ;;  %3112 = vmatprep.mubr.msk.f32.mxu1 %vm3643_vm1, %v3644_v11 }
 0x31e   :  { %3370 = vmatpush3.bf16.msra.mxu0 %v3711_v12  ;;  %3376 = vmatpush3.bf16.msra.mxu1 %v3715_v13 }
 0x31f   :  { %3377 = vmatprep.subr.bf16.mxu0 %v3642_v3  ;;  %3383 = vmatprep.subr.bf16.mxu1 %v3642_v3 }
 0x3e4   :  { %v1078_v22 = vpop.f32.mrb[12].mxu0  ;;  %v1157_v23 = vpop.f32.mrb[12].mxu1 }
 0x3e5   :  { %v1082_v24 = vadd.f32 %v2697_v20, %v1078_v22  ;;  %v1161_v27 = vadd.f32 %v2700_v21, %v1157_v23  ;;  %v3059_v28 = vpop.f32.mrb[13].mxu0  ;;  %v3070_v29 = vpop.f32.mrb[13].mxu1 }
 0x3e7   :  { %v2699_v30 = vmul.f32 -1.442695, %v1082_v24  ;;  %v2702_v31 = vmul.f32 -1.442695, %v1161_v27 }
 0x3e9   :  { %3514 = vpow2.f32 %v2699_v30 }
 0x3ea   :  { %3516 = vpow2.f32 %v2702_v31 }
 0x3ec   :  { %v1236_v33 = vpop.f32.mrb[14].mxu0  ;;  %v1310_v34 = vpop.f32.mrb[14].mxu1 }
 0x3ed   :  { %v1314_v35 = vadd.f32 %v2705_v32, %v1310_v34  ;;  %v3081_v36 = vpop.f32.mrb[15].mxu0  ;;  %v3092_v37 = vpop.f32.mrb[15].mxu1  ;;  %v1240_v40 = vadd.f32 %v2703_v38, %v1236_v33 }
 0x3ee   :  { %v2721_v36 = vld [vmem:[%s4144_s0 + $0xa] sm:$0x3]  ;;  %v2724_v37 = vld [vmem:[%s4144_s0 + $0x1a] sm:$0x3] }
 0x3ef   :  { %v2707_v39 = vmul.f32 -1.442695, %v1314_v35 }
 0x3f1   :  { %3518 = vpow2.f32 %v2707_v39 }
 0x3f2   :  { %3520 = vtanh.f32 %v1240_v40 }
 0x3f3   :  { %v3515_v41 = vpop.eup %3514 }
 0x3f4   :  { %v3517_v42 = vpop.eup %3516  ;;  %v1086_v43 = vadd.f32 1.0, %v3515_v41 }
 0x3f5   :  { %v1165_v44 = vadd.f32 1.0, %v3517_v42 }
 0x3f6   :  { %3522 = vrcp.f32 %v1086_v43 }
 0x3f7   :  { %3524 = vrcp.f32 %v1165_v44 }
 0x3fb   :  { %v3519_v45 = vpop.eup %3518 }
 0x3fc   :  { %v3521_v46 = vpop.eup %3520  ;;  %v1318_v50 = vadd.f32 1.0, %v3519_v45 }
 0x3fe   :  { %3526 = vrcp.f32 %v1318_v50 }
 0x400   :  { %v3523_v47 = vpop.eup %3522 }
 0x401   :  { %v3525_v48 = vpop.eup %3524  ;;  %v1322_v49 = vmul.f32 %v3523_v47, %v3521_v46  ;;  %v2729_v46 = vld [vmem:[%s4144_s0 + $0x3a] sm:$0x3] }
 0x402   :  { %v1321_v51 = vmul.f32 %v3525_v48, %v3890_v14  ;;  %v2715_v14 = vld [vmem:[%s4144_s0 + $0x28] sm:$0x3] }
 0x404   :  { %v3938_v52 = vadd.f32 %v1322_v49, %v1321_v51 }
 0x406   :  { %3528 = vtanh.f32 %v3938_v52 }
 0x408   :  { %v3527_v53 = vpop.eup %3526 }
 0x410   :  { %v3529_v54 = vpop.eup %3528 }
 0x411   :  { %v1325_v55 = vmul.f32 %v3529_v54, %v3527_v53 }
 0x413   :  { %2708 = vst.msk [vmem:[%s4146_s2 + $0x6] sm:$0x3] %vm20_vm0, %v1325_v55  ;;  %3102 = vmatmul.mubr.msk.f32.vlgmr.msra.gmra.mrb[16].mxu0 %vm45_vm2, %v1325_v55  ;;  %3113 = vmatmul.mubr.msk.f32.vlgmr.msra.gmra.mrb[16].mxu1 %vm45_vm2, %v1325_v55 }
 0x414   :  { %3379 = vmatpush3.bf16.msra.mxu0 %v3731_v18  ;;  %3385 = vmatpush3.bf16.msra.mxu1 %v3735_v19 }
 0x415   :  { %3380 = vmatprep.subr.bf16.mxu0 %v3642_v3  ;;  %3386 = vmatprep.subr.bf16.mxu1 %v3642_v3 }
 0x416   :  { %3123 = vmatprep.mubr.msk.f32.mxu0 %vm3643_vm1, %v3644_v11  ;;  %3134 = vmatprep.mubr.msk.f32.mxu1 %vm3643_vm1, %v3644_v11 }
 0x418   :  { %3382 = vmatpush3.bf16.msra.mxu0 %v3753_v25  ;;  %3388 = vmatpush3.bf16.msra.mxu1 %v3757_v26 }
 0x419   :  { %3389 = vmatprep.subr.bf16.mxu0 %v3642_v3  ;;  %3395 = vmatprep.subr.bf16.mxu1 %v3642_v3 }
 0x41b   :  { %3124 = vmatmul.mubr.msk.f32.vlgmr.msra.gmra.mrb[18].mxu0 %vm45_vm2, %v1325_v55  ;;  %3135 = vmatmul.mubr.msk.f32.vlgmr.msra.gmra.mrb[18].mxu1 %vm45_vm2, %v1325_v55 }
 0x41c   :  { %3391 = vmatpush3.bf16.msra.mxu0 %v3683_v4  ;;  %3397 = vmatpush3.bf16.msra.mxu1 %v3694_v8 }
 0x41d   :  { %3392 = vmatprep.subr.bf16.mxu0 %v3642_v3  ;;  %3398 = vmatprep.subr.bf16.mxu1 %v3642_v3 }
 0x41e   :  { %3145 = vmatprep.mubr.msk.f32.mxu0 %vm3643_vm1, %v3644_v11  ;;  %3156 = vmatprep.mubr.msk.f32.mxu1 %vm3643_vm1, %v3644_v11 }
 0x420   :  { %3394 = vmatpush3.bf16.msra.mxu0 %v3711_v12  ;;  %3400 = vmatpush3.bf16.msra.mxu1 %v3715_v13 }
 0x421   :  { %3401 = vmatprep.subr.bf16.mxu0 %v3642_v3  ;;  %3407 = vmatprep.subr.bf16.mxu1 %v3642_v3 }
 0x4e6   :  { %v1399_v58 = vpop.f32.mrb[16].mxu0  ;;  %v1478_v59 = vpop.f32.mrb[16].mxu1 }
 0x4e7   :  { %v1403_v60 = vadd.f32 %v2709_v56, %v1399_v58  ;;  %v1482_v61 = vadd.f32 %v2712_v57, %v1478_v59  ;;  %v3103_v62 = vpop.f32.mrb[17].mxu0  ;;  %v3114_v63 = vpop.f32.mrb[17].mxu1 }
 0x4e9   :  { %v2711_v0 = vmul.f32 -1.442695, %v1403_v60  ;;  %v2714_v1 = vmul.f32 -1.442695, %v1482_v61 }
 0x4eb   :  { %3530 = vpow2.f32 %v2711_v0 }
 0x4ec   :  { %3532 = vpow2.f32 %v2714_v1 }
 0x4ee   :  { %v1557_v5 = vpop.f32.mrb[18].mxu0  ;;  %v1631_v6 = vpop.f32.mrb[18].mxu1 }
 0x4ef   :  { %v1635_v7 = vadd.f32 %v2717_v2, %v1631_v6  ;;  %v3125_v9 = vpop.f32.mrb[19].mxu0  ;;  %v3136_v10 = vpop.f32.mrb[19].mxu1  ;;  %v1561_v16 = vadd.f32 %v2715_v14, %v1557_v5 }
 0x4f1   :  { %v2719_v15 = vmul.f32 -1.442695, %v1635_v7 }
 0x4f3   :  { %3534 = vpow2.f32 %v2719_v15 }
 0x4f4   :  { %3536 = vtanh.f32 %v1561_v16 }
 0x4f5   :  { %v3531_v17 = vpop.eup %3530 }
 0x4f6   :  { %v3533_v20 = vpop.eup %3532  ;;  %v1407_v21 = vadd.f32 1.0, %v3531_v17 }
 0x4f7   :  { %v1486_v22 = vadd.f32 1.0, %v3533_v20  ;;  %v2741_v20 = vld [vmem:[%s4144_s0 + $0x3c] sm:$0x3] }
 0x4f8   :  { %3538 = vrcp.f32 %v1407_v21 }
 0x4f9   :  { %3540 = vrcp.f32 %v1486_v22 }
 0x4fd   :  { %v3535_v23 = vpop.eup %3534 }
 0x4fe   :  { %v3537_v24 = vpop.eup %3536  ;;  %v1639_v30 = vadd.f32 1.0, %v3535_v23 }
 0x500   :  { %3542 = vrcp.f32 %v1639_v30 }
 0x502   :  { %v3539_v27 = vpop.eup %3538 }
 0x503   :  { %v3541_v28 = vpop.eup %3540  ;;  %v1643_v29 = vmul.f32 %v3539_v27, %v3537_v24 }
 0x504   :  { %v1642_v31 = vmul.f32 %v3541_v28, %v3938_v52  ;;  %v2727_v52 = vld [vmem:[%s4144_s0 + $0x2a] sm:$0x3]  ;;  %v2739_v28 = vld [vmem:[%s4144_s0 + $0x2c] sm:$0x3] }
 0x506   :  { %v3986_v32 = vadd.f32 %v1643_v29, %v1642_v31 }
 0x508   :  { %3544 = vtanh.f32 %v3986_v32 }
 0x50a   :  { %v3543_v33 = vpop.eup %3542 }
 0x512   :  { %v3545_v34 = vpop.eup %3544 }
 0x513   :  { %v1646_v35 = vmul.f32 %v3545_v34, %v3543_v33 }
 0x515   :  { %2720 = vst.msk [vmem:[%s4146_s2 + $0x8] sm:$0x3] %vm20_vm0, %v1646_v35  ;;  %3146 = vmatmul.mubr.msk.f32.vlgmr.msra.gmra.mrb[20].mxu0 %vm45_vm2, %v1646_v35  ;;  %3157 = vmatmul.mubr.msk.f32.vlgmr.msra.gmra.mrb[20].mxu1 %vm45_vm2, %v1646_v35 }
 0x516   :  { %3403 = vmatpush3.bf16.msra.mxu0 %v3731_v18  ;;  %3409 = vmatpush3.bf16.msra.mxu1 %v3735_v19 }
 0x517   :  { %3404 = vmatprep.subr.bf16.mxu0 %v3642_v3  ;;  %3410 = vmatprep.subr.bf16.mxu1 %v3642_v3 }
 0x518   :  { %3167 = vmatprep.mubr.msk.f32.mxu0 %vm3643_vm1, %v3644_v11  ;;  %3178 = vmatprep.mubr.msk.f32.mxu1 %vm3643_vm1, %v3644_v11 }
 0x51a   :  { %3406 = vmatpush3.bf16.msra.mxu0 %v3753_v25  ;;  %3412 = vmatpush3.bf16.msra.mxu1 %v3757_v26 }
 0x51b   :  { %3413 = vmatprep.subr.bf16.mxu0 %v3642_v3  ;;  %3419 = vmatprep.subr.bf16.mxu1 %v3642_v3 }
 0x51d   :  { %3168 = vmatmul.mubr.msk.f32.vlgmr.msra.gmra.mrb[22].mxu0 %vm45_vm2, %v1646_v35  ;;  %3179 = vmatmul.mubr.msk.f32.vlgmr.msra.gmra.mrb[22].mxu1 %vm45_vm2, %v1646_v35 }
 0x51e   :  { %3415 = vmatpush3.bf16.msra.mxu0 %v3683_v4  ;;  %3421 = vmatpush3.bf16.msra.mxu1 %v3694_v8 }
 0x51f   :  { %3416 = vmatprep.subr.bf16.mxu0 %v3642_v3  ;;  %3422 = vmatprep.subr.bf16.mxu1 %v3642_v3 }
 0x520   :  { %3189 = vmatprep.mubr.msk.f32.mxu0 %vm3643_vm1, %v3644_v11  ;;  %3200 = vmatprep.mubr.msk.f32.mxu1 %vm3643_vm1, %v3644_v11 }
 0x522   :  { %3418 = vmatpush3.bf16.msra.mxu0 %v3711_v12  ;;  %3424 = vmatpush3.bf16.msra.mxu1 %v3715_v13 }
 0x523   :  { %3425 = vmatprep.subr.bf16.mxu0 %v3642_v3  ;;  %3431 = vmatprep.subr.bf16.mxu1 %v3642_v3 }
 0x5e8   :  { %v1720_v38 = vpop.f32.mrb[20].mxu0  ;;  %v1799_v39 = vpop.f32.mrb[20].mxu1 }
 0x5e9   :  { %v1724_v40 = vadd.f32 %v2721_v36, %v1720_v38  ;;  %v1803_v41 = vadd.f32 %v2724_v37, %v1799_v39  ;;  %v3147_v42 = vpop.f32.mrb[21].mxu0  ;;  %v3158_v43 = vpop.f32.mrb[21].mxu1 }
 0x5eb   :  { %v2723_v44 = vmul.f32 -1.442695, %v1724_v40  ;;  %v2726_v45 = vmul.f32 -1.442695, %v1803_v41 }
 0x5ed   :  { %3546 = vpow2.f32 %v2723_v44 }
 0x5ee   :  { %3548 = vpow2.f32 %v2726_v45 }
 0x5f0   :  { %v1878_v47 = vpop.f32.mrb[22].mxu0  ;;  %v1952_v48 = vpop.f32.mrb[22].mxu1 }
 0x5f1   :  { %v1956_v49 = vadd.f32 %v2729_v46, %v1952_v48  ;;  %v3169_v50 = vpop.f32.mrb[23].mxu0  ;;  %v3180_v51 = vpop.f32.mrb[23].mxu1  ;;  %v1882_v54 = vadd.f32 %v2727_v52, %v1878_v47 }
 0x5f2   :  { %v2753_v50 = vld [vmem:[%s4144_s0 + $0x3e] sm:$0x3] }
 0x5f3   :  { %v2731_v53 = vmul.f32 -1.442695, %v1956_v49 }
 0x5f5   :  { %3550 = vpow2.f32 %v2731_v53 }
 0x5f6   :  { %3552 = vtanh.f32 %v1882_v54 }
 0x5f7   :  { %v3547_v55 = vpop.eup %3546 }
 0x5f8   :  { %v3549_v56 = vpop.eup %3548  ;;  %v1728_v57 = vadd.f32 1.0, %v3547_v55 }
 0x5f9   :  { %v1807_v58 = vadd.f32 1.0, %v3549_v56  ;;  %v2751_v56 = vld [vmem:[%s4144_s0 + $0x2e] sm:$0x3] }
 0x5fa   :  { %3554 = vrcp.f32 %v1728_v57 }
 0x5fb   :  { %3556 = vrcp.f32 %v1807_v58 }
 0x5ff   :  { %v3551_v59 = vpop.eup %3550 }
 0x600   :  { %v3553_v60 = vpop.eup %3552  ;;  %v1960_v0 = vadd.f32 1.0, %v3551_v59 }
 0x602   :  { %3558 = vrcp.f32 %v1960_v0 }
 0x604   :  { %v3555_v61 = vpop.eup %3554 }
 0x605   :  { %v3557_v62 = vpop.eup %3556  ;;  %v1964_v63 = vmul.f32 %v3555_v61, %v3553_v60 }
 0x606   :  { %v1963_v1 = vmul.f32 %v3557_v62, %v3986_v32 }
 0x608   :  { %v4034_v2 = vadd.f32 %v1964_v63, %v1963_v1 }
 0x60a   :  { %3560 = vtanh.f32 %v4034_v2 }
 0x60c   :  { %v3559_v5 = vpop.eup %3558 }
 0x614   :  { %v3561_v6 = vpop.eup %3560 }
 0x615   :  { %v1967_v7 = vmul.f32 %v3561_v6, %v3559_v5 }
 0x617   :  { %2732 = vst.msk [vmem:[%s4146_s2 + $0xa] sm:$0x3] %vm20_vm0, %v1967_v7  ;;  %3190 = vmatmul.mubr.msk.f32.vlgmr.msra.gmra.mrb[24].mxu0 %vm45_vm2, %v1967_v7  ;;  %3201 = vmatmul.mubr.msk.f32.vlgmr.msra.gmra.mrb[24].mxu1 %vm45_vm2, %v1967_v7 }
 0x618   :  { %3427 = vmatpush3.bf16.msra.mxu0 %v3731_v18  ;;  %3433 = vmatpush3.bf16.msra.mxu1 %v3735_v19 }
 0x619   :  { %3428 = vmatprep.subr.bf16.mxu0 %v3642_v3  ;;  %3434 = vmatprep.subr.bf16.mxu1 %v3642_v3 }
 0x61a   :  { %3211 = vmatprep.mubr.msk.f32.mxu0 %vm3643_vm1, %v3644_v11  ;;  %3222 = vmatprep.mubr.msk.f32.mxu1 %vm3643_vm1, %v3644_v11 }
 0x61c   :  { %3430 = vmatpush3.bf16.msra.mxu0 %v3753_v25  ;;  %3436 = vmatpush3.bf16.msra.mxu1 %v3757_v26 }
 0x61d   :  { %3437 = vmatprep.subr.bf16.mxu0 %v3642_v3  ;;  %3443 = vmatprep.subr.bf16.mxu1 %v3642_v3 }
 0x61f   :  { %3212 = vmatmul.mubr.msk.f32.vlgmr.msra.gmra.mrb[26].mxu0 %vm45_vm2, %v1967_v7  ;;  %3223 = vmatmul.mubr.msk.f32.vlgmr.msra.gmra.mrb[26].mxu1 %vm45_vm2, %v1967_v7 }
 0x620   :  { %3439 = vmatpush3.bf16.msra.mxu0 %v3683_v4  ;;  %3445 = vmatpush3.bf16.msra.mxu1 %v3694_v8  ;;  %v2733_v4 = vld [vmem:[%s4144_s0 + $0xc] sm:$0x3]  ;;  %v2736_v8 = vld [vmem:[%s4144_s0 + $0x1c] sm:$0x3] }
 0x621   :  { %3440 = vmatprep.subr.bf16.mxu0 %v3642_v3  ;;  %3446 = vmatprep.subr.bf16.mxu1 %v3642_v3 }
 0x622   :  { %3233 = vmatprep.mubr.msk.f32.mxu0 %vm3643_vm1, %v3644_v11  ;;  %3244 = vmatprep.mubr.msk.f32.mxu1 %vm3643_vm1, %v3644_v11 }
 0x624   :  { %3442 = vmatpush3.bf16.msra.mxu0 %v3711_v12  ;;  %3448 = vmatpush3.bf16.msra.mxu1 %v3715_v13 }
 0x625   :  { %3449 = vmatprep.subr.bf16.mxu0 %v3642_v3  ;;  %3455 = vmatprep.subr.bf16.mxu1 %v3642_v3 }
 0x6ea   :  { %v2041_v9 = vpop.f32.mrb[24].mxu0  ;;  %v2120_v10 = vpop.f32.mrb[24].mxu1 }
 0x6eb   :  { %v2045_v14 = vadd.f32 %v2733_v4, %v2041_v9  ;;  %v2124_v15 = vadd.f32 %v2736_v8, %v2120_v10  ;;  %v3191_v16 = vpop.f32.mrb[25].mxu0  ;;  %v3202_v12 = vpop.f32.mrb[25].mxu1 }
 0x6ed   :  { %v2735_v17 = vmul.f32 -1.442695, %v2045_v14  ;;  %v2738_v13 = vmul.f32 -1.442695, %v2124_v15 }
 0x6ef   :  { %3562 = vpow2.f32 %v2735_v17 }
 0x6f0   :  { %3564 = vpow2.f32 %v2738_v13 }
 0x6f2   :  { %v2199_v21 = vpop.f32.mrb[26].mxu0  ;;  %v2273_v22 = vpop.f32.mrb[26].mxu1 }
 0x6f3   :  { %v2277_v23 = vadd.f32 %v2741_v20, %v2273_v22  ;;  %v3213_v24 = vpop.f32.mrb[27].mxu0  ;;  %v3224_v27 = vpop.f32.mrb[27].mxu1  ;;  %v2203_v30 = vadd.f32 %v2739_v28, %v2199_v21 }
 0x6f5   :  { %v2743_v29 = vmul.f32 -1.442695, %v2277_v23 }
 0x6f7   :  { %3566 = vpow2.f32 %v2743_v29 }
 0x6f8   :  { %3568 = vtanh.f32 %v2203_v30 }
 0x6f9   :  { %v3563_v31 = vpop.eup %3562 }
 0x6fa   :  { %v3565_v32 = vpop.eup %3564  ;;  %v2049_v33 = vadd.f32 1.0, %v3563_v31 }
 0x6fb   :  { %v2128_v34 = vadd.f32 1.0, %v3565_v32 }
 0x6fc   :  { %3570 = vrcp.f32 %v2049_v33 }
 0x6fd   :  { %3572 = vrcp.f32 %v2128_v34 }
 0x701   :  { %v3567_v35 = vpop.eup %3566 }
 0x702   :  { %v3569_v36 = vpop.eup %3568  ;;  %v2281_v40 = vadd.f32 1.0, %v3567_v35 }
 0x704   :  { %3574 = vrcp.f32 %v2281_v40 }
 0x706   :  { %v3571_v37 = vpop.eup %3570 }
 0x707   :  { %v3573_v38 = vpop.eup %3572  ;;  %v2285_v39 = vmul.f32 %v3571_v37, %v3569_v36 }
 0x708   :  { %v2284_v41 = vmul.f32 %v3573_v38, %v4034_v2 }
 0x70a   :  { %v2286_v42 = vadd.f32 %v2285_v39, %v2284_v41 }
 0x70c   :  { %3576 = vtanh.f32 %v2286_v42 }
 0x70e   :  { %v3575_v43 = vpop.eup %3574 }
 0x716   :  { %v3577_v44 = vpop.eup %3576 }
 0x717   :  { %v2288_v45 = vmul.f32 %v3577_v44, %v3575_v43 }
 0x719   :  { %2744 = vst.msk [vmem:[%s4146_s2 + $0xc] sm:$0x3] %vm20_vm0, %v2288_v45  ;;  %3234 = vmatmul.mubr.msk.f32.vlgmr.msra.gmra.mrb[28].mxu0 %vm45_vm2, %v2288_v45  ;;  %3245 = vmatmul.mubr.msk.f32.vlgmr.msra.gmra.mrb[28].mxu1 %vm45_vm2, %v2288_v45 }
 0x71a   :  { %3451 = vmatpush3.bf16.msra.mxu0 %v3731_v18  ;;  %3457 = vmatpush3.bf16.msra.mxu1 %v3735_v19  ;;  %v2745_v18 = vld [vmem:[%s4144_s0 + $0xe] sm:$0x3] }
 0x71b   :  { %3452 = vmatprep.subr.bf16.mxu0 %v3642_v3  ;;  %3458 = vmatprep.subr.bf16.mxu1 %v3642_v3  ;;  %v2748_v3 = vld [vmem:[%s4144_s0 + $0x1e] sm:$0x3]  ;;  %s3594_s0 = scalar_lea.vmem %s2638_s19, 32 }
 0x71c   :  { %3255 = vmatprep.mubr.msk.f32.mxu0 %vm3643_vm1, %v3644_v11  ;;  %3266 = vmatprep.mubr.msk.f32.mxu1 %vm3643_vm1, %v3644_v11  ;;  %p3595_p0 = scmp.ne.s32.totalorder %s2638_s19, %s3594_s0  ;;  %p3600_p2 = scmp.lt.s32.totalorder %s3594_s0, %s3594_s0 }
 0x71e   :  { %3454 = vmatpush3.bf16.msra.mxu0 %v3753_v25  ;;  %3460 = vmatpush3.bf16.msra.mxu1 %v3757_v26  ;;  %p3601_p3 = por %p3600_p2, %p3599_p1 }
 0x720   :  { %p3602_p4 = pnand %p3601_p3, %p3595_p0 }
 0x721   :  { %3256 = vmatmul.mubr.msk.f32.vlgmr.msra.gmra.mrb[30].mxu0 %vm45_vm2, %v2288_v45  ;;  %3267 = vmatmul.mubr.msk.f32.vlgmr.msra.gmra.mrb[30].mxu1 %vm45_vm2, %v2288_v45 }
 0x7ec   :  { %v2362_v19 = vpop.f32.mrb[28].mxu0  ;;  %v2441_v46 = vpop.f32.mrb[28].mxu1 }
 0x7ed   :  { %v2366_v47 = vadd.f32 %v2745_v18, %v2362_v19  ;;  %v2445_v11 = vadd.f32 %v2748_v3, %v2441_v46  ;;  %v3235_v48 = vpop.f32.mrb[29].mxu0  ;;  %v3246_v25 = vpop.f32.mrb[29].mxu1 }
 0x7ef   :  { %v2747_v49 = vmul.f32 -1.442695, %v2366_v47  ;;  %v2750_v26 = vmul.f32 -1.442695, %v2445_v11 }
 0x7f1   :  { %3578 = vpow2.f32 %v2747_v49 }
 0x7f2   :  { %3580 = vpow2.f32 %v2750_v26 }
 0x7f4   :  { %v2520_v51 = vpop.f32.mrb[30].mxu0  ;;  %v2594_v52 = vpop.f32.mrb[30].mxu1 }
 0x7f5   :  { %v2598_v53 = vadd.f32 %v2753_v50, %v2594_v52  ;;  %v3257_v54 = vpop.f32.mrb[31].mxu0  ;;  %v3268_v55 = vpop.f32.mrb[31].mxu1  ;;  %v2524_v58 = vadd.f32 %v2751_v56, %v2520_v51 }
 0x7f7   :  { %v2755_v57 = vmul.f32 -1.442695, %v2598_v53 }
 0x7f9   :  { %3582 = vpow2.f32 %v2755_v57 }
 0x7fa   :  { %3584 = vtanh.f32 %v2524_v58 }
 0x7fb   :  { %v3579_v59 = vpop.eup %3578 }
 0x7fc   :  { %v3581_v60 = vpop.eup %3580  ;;  %v2370_v61 = vadd.f32 1.0, %v3579_v59 }
 0x7fd   :  { %v2449_v62 = vadd.f32 1.0, %v3581_v60 }
 0x7fe   :  { %3586 = vrcp.f32 %v2370_v61 }
 0x7ff   :  { %3588 = vrcp.f32 %v2449_v62 }
 0x803   :  { %v3583_v63 = vpop.eup %3582 }
 0x804   :  { %v3585_v0 = vpop.eup %3584  ;;  %v2602_v6 = vadd.f32 1.0, %v3583_v63 }
 0x806   :  { %3590 = vrcp.f32 %v2602_v6 }
 0x808   :  { %v3587_v1 = vpop.eup %3586 }
 0x809   :  { %v3589_v2 = vpop.eup %3588  ;;  %v2606_v5 = vmul.f32 %v3587_v1, %v3585_v0 }
 0x80a   :  { %v2605_v7 = vmul.f32 %v3589_v2, %v2286_v42 }
 0x80c   :  { %v2607_v4 = vadd.f32 %v2606_v5, %v2605_v7 }
 0x80e   :  { %2613 = vst.msk [vmem:[#allocation3] sm:$0x3] %vm20_vm0, %v2607_v4  ;;  %2618 = vst.msk [vmem:[#allocation6] sm:$0x3] %vm20_vm0, %v2607_v4  ;;  %3592 = vtanh.f32 %v2607_v4 }
 0x80f   :  { %3605 = shalt.err (!%p3602_p4)
}
 0x810   :  { %s3606_s21 = scalar_lea.hbm %s4148_s4, 32 }
 0x811   :  { %p3607_p5 = scmp.ne.s32.totalorder %s4148_s4, %s3606_s21  ;;  %p3610_p6 = scmp.lt.u32.totalorder %s3606_s21, %s4148_s4 }
 0x813   :  { %p3612_p7 = pnand %p3610_p6, %p3607_p5 }
 0x815   :  { %3615 = shalt.err (!%p3612_p7)
}
 0x816   :  { %2640 = dma.vmem_to_hbm [thread:$0]  %s2638_s19, 32, %s4148_s4, [#allocation7]   ;;  %v3591_v8 = vpop.eup %3590 }
 0x817   :  { %s3646_s28 = smov [#allocation4]  }
 0x818   :  { %s2627_s29 = sshll.u32 %s3646_s28, 4  ;;  %v3593_v9 = vpop.eup %3592  ;;  %s2628_s29 = int_to_ptr.vmem [resolvable:$true] %s2627_s29 }
 0x819   :  { %v2609_v10 = vmul.f32 %v3593_v9, %v3591_v8  ;;  %s3616_s6 = scalar_lea.vmem %s2628_s29, 32  ;;  %p3621_p9 = scmp.lt.s32.totalorder %s2628_s29, %s2628_s29 }
 0x81a   :  { %p3617_p8 = scmp.ne.s32.totalorder %s2628_s29, %s3616_s6  ;;  %p3622_p10 = scmp.lt.s32.totalorder %s3616_s6, %s3616_s6 }
 0x81b   :  { %2756 = vst.msk [vmem:[%s4146_s2 + $0xe] sm:$0x3] %vm20_vm0, %v2609_v10  ;;  %2612 = vst.msk [vmem:[#allocation2] sm:$0x3] %vm20_vm0, %v2609_v10 }
 0x81c   :  { %2617 = vst.msk [vmem:[#allocation4] sm:$0x3] %vm20_vm0, %v2609_v10  ;;  %p3623_p11 = por %p3622_p10, %p3621_p9 }
 0x81e   :  { %p3624_p12 = pnand %p3623_p11, %p3617_p8 }
 0x820   :  { %3627 = shalt.err (!%p3624_p12)
}
 0x821   :  { %s3628_s8 = scalar_lea.hbm %s4147_s3, 32 }
 0x822   :  { %p3629_p13 = scmp.ne.s32.totalorder %s4147_s3, %s3628_s8  ;;  %p3632_p0 = scmp.lt.u32.totalorder %s3628_s8, %s4147_s3 }
 0x824   :  { %p3634_p1 = pnand %p3632_p0, %p3629_p13 }
 0x826   :  { %3637 = shalt.err (!%p3634_p1)
}
 0x827   :  { %2630 = dma.vmem_to_hbm [thread:$0]  %s2628_s29, 32, %s4147_s3, [#allocation5]  }
 0x828   :  { %3638 = dma.done.wait [#allocation5], 32  }
 0x829   :  { %3639 = vsyncadd [#allocation5], 4294967264 }
 0x82a   :  { %3640 = dma.done.wait [#allocation7], 32  }
 0x82b   :  { %3641 = vsyncadd [#allocation7], 4294967264 }
 0x82c   :  { %2649 = vsyncpa [#allocation5], 1 }
 0x82d   :  { %2650 = vsyncpa [#allocation7], 1 }

</bundles_post_ra>
